<compile_context>
chip_gen: v6e
topology: v6e:2x2x1
jax: 0.10.0
libtpu: 0.0.40
codegen_flags: <defaults>
</compile_context>

<pallas_src>
import jax
import jax.numpy as jnp
import numpy as np
from jax.experimental import pallas as pl
from jax.experimental.pallas import tpu as pltpu


def _up8(n):
    return ((n + 7) // 8) * 8


def _lstm_slab_layout(D, M, L):
    """Static row layout of the packed LSTM weight slab (lane width = 4M)."""
    layout = []
    row = 0
    for l in range(L):
        in_dim = D if l == 0 else M
        o_ih = row
        row += _up8(in_dim)
        o_hh = row
        row += _up8(M)
        o_b = row
        row += 8
        layout.append((o_ih, in_dim, o_hh, o_b))
    return layout, row


def _make_kernel(Bp, T, D, M, L, lstm_layout):
    """Builds the Pallas kernel body for fixed static sizes (Bp = padded batch)."""
    G = 4 * M

    def kernel(x_ref, hc0_ref, wA_ref, wB_ref, wC_ref, out_ref):
        # Gate-activation masks, built once.  The 0.5 *pre*-scale of
        # sigmoid(z)=0.5*tanh(z/2)+0.5 is already folded into the packed weights,
        # only the post-scale + post-bias remain on the serial path.
        lane = jax.lax.broadcasted_iota(jnp.int32, (Bp, G), 1)
        is_g = jnp.logical_and(lane >= 2 * M, lane < 3 * M)
        post_scale = jnp.where(is_g, 1.0, 0.5).astype(jnp.float32)
        post_bias = jnp.where(is_g, 0.0, 0.5).astype(jnp.float32)

        # ---- multi-layer LSTM (statically unrolled; T, L small) -------------------
        layer_in = x_ref[...]                        # (T*Bp, D) time-major, layer 0
        final_h = None
        for l in range(L):
            o_ih, in_dim, o_hh, o_b = lstm_layout[l]
            w_ih = wA_ref[o_ih:o_ih + in_dim, :]     # (in_dim, 4M)  (0.5-folded)
            w_hh = wA_ref[o_hh:o_hh + M, :]          # (M, 4M)       (0.5-folded)
            b = wA_ref[o_b:o_b + 1, :]               # (1, 4M)       (0.5-folded)

            # Hoisted input projection for ALL timesteps + fused bias (one MXU push
            # per layer, off the serial recurrence chain).
            xproj = jnp.dot(layer_in, w_ih,
                            preferred_element_type=jnp.float32) + b   # (T*Bp, 4M)

            h = hc0_ref[0, l, :, :]                  # (Bp, M)
            c = hc0_ref[1, l, :, :]                  # (Bp, M)
            hs = []
            # TODO(synk): if T or M grow (T>=32 or M>=128), switch to a
            # lax.fori_loop(..., unroll=True) over an 8-row-aligned VMEM scratch and
            # stage W_hh across steps with pltpu.matmul_push_rhs/matmul_acc_lhs
            # (v7x MRB accumulate) instead of fully unrolling in vregs.
            for t in range(T):
                # 8-row-aligned sublane slice: whole-vreg tile, no relayout.
                gates = xproj[t * Bp:(t + 1) * Bp, :] + jnp.dot(
                    h, w_hh, preferred_element_type=jnp.float32)       # (Bp, 4M)
                # one full-width EUP tanh covers all four gates
                act = jnp.tanh(gates) * post_scale + post_bias
                i_g = act[:, 0 * M:1 * M]
                f_g = act[:, 1 * M:2 * M]
                g_g = act[:, 2 * M:3 * M]
                o_g = act[:, 3 * M:4 * M]
                c = f_g * c + i_g * g_g
                h = o_g * jnp.tanh(c)
                hs.append(h)                         # stays in vregs
            # Bp is a multiple of 8 -> whole 8-row-tile placement (cheap concat).
            layer_in = jnp.concatenate(hs, axis=0)   # (T*Bp, M) -> next layer / attn
            final_h = h                              # last layer's h_T

        # ---- attention: vectorized slab ops (single multiply/reduce/exp passes) ---
        seq2d = layer_in                             # (T*Bp, M)
        w1 = wB_ref[0:M, :]                          # attn.fc1.weight.T
        w2c = wB_ref[M:2 * M, :]                     # attn.fc2.weight.T[:M]
        w2h = wB_ref[2 * M:3 * M, :]                 # attn.fc2.weight.T[M:]

        proj3 = jnp.dot(seq2d, w1,
                        preferred_element_type=jnp.float32).reshape(T, Bp, M)
        scores = jnp.sum(proj3 * final_h[None, :, :], axis=-1,
                         keepdims=True)              # (T, Bp, 1)
        m = jnp.max(scores, axis=0, keepdims=True)   # (1, Bp, 1)
        e = jnp.exp(scores - m)                      # one exp pass over the slab
        attn_w = e / jnp.sum(e, axis=0, keepdims=True)          # softmax over T
        context = jnp.sum(seq2d.reshape(T, Bp, M) * attn_w, axis=0)   # (Bp, M)

        # split-weight fc2 avoids the lane concat of [context, final_h]
        attn_vec = jnp.tanh(
            jnp.dot(context, w2c, preferred_element_type=jnp.float32)
            + jnp.dot(final_h, w2h, preferred_element_type=jnp.float32))  # (Bp, M)

        # fc + classifier folded into one affine head at pack time (exact composition)
        w_head = wC_ref[0:M, :]                      # (M, 1)
        b_head = wC_ref[M:M + 1, :]                  # (1, 1)
        out_ref[...] = jnp.dot(attn_vec, w_head,
                               preferred_element_type=jnp.float32) + b_head  # (Bp, 1)

    return kernel


def init_params(key, D, M, K, L):
    """Raw parameters in PyTorch layout (what the nn.Module would hold)."""
    keys = list(jax.random.split(key, 4 * L + 6))

    def u(k, shape, fan_in):
        bound = 1.0 / np.sqrt(float(fan_in))
        return jax.random.uniform(k, shape, jnp.float32, -bound, bound)

    ki = 0
    lstm = []
    for l in range(L):
        in_dim = D if l == 0 else M
        w_ih = u(keys[ki], (4 * M, in_dim), M); ki += 1
        w_hh = u(keys[ki], (4 * M, M), M); ki += 1
        b_ih = u(keys[ki], (4 * M,), M); ki += 1
        b_hh = u(keys[ki], (4 * M,), M); ki += 1
        lstm.append((w_ih, w_hh, b_ih, b_hh))
    params = {"lstm": lstm}
    params["w1"] = u(keys[ki], (M, M), M); ki += 1           # attn.fc1.weight
    params["w2"] = u(keys[ki], (M, 2 * M), 2 * M); ki += 1   # attn.fc2.weight
    params["wfc"] = u(keys[ki], (K, M), M); ki += 1          # fc.weight
    params["bfc"] = u(keys[ki], (K,), M); ki += 1            # fc.bias
    params["wcl"] = u(keys[ki], (1, K), K); ki += 1          # classifier.weight
    params["bcl"] = u(keys[ki], (1,), K); ki += 1            # classifier.bias
    return params


def pack_params(params, *, D, M, K, L):
    """One-time parameter transform: transpose, bias fuse, 0.5 gate-column fold,
    fc+classifier fold, and packing into 3 lane-dense DMA slabs."""
    G = 4 * M
    col = np.arange(G)
    is_g = (col >= 2 * M) & (col < 3 * M)
    col_scale = jnp.asarray(np.where(is_g, 1.0, 0.5), jnp.float32)   # (G,)

    def pad_rows(a):
        pad = (-a.shape[0]) % 8
        return jnp.pad(a, ((0, pad), (0, 0))) if pad else a

    blocks = []
    for l in range(L):
        w_ih, w_hh, b_ih, b_hh = params["lstm"][l]
        blocks.append(pad_rows(w_ih.T * col_scale))                      # W_ih^T
        blocks.append(pad_rows(w_hh.T * col_scale))                      # W_hh^T
        blocks.append(pad_rows(((b_ih + b_hh) * col_scale)[None, :]))    # fused bias
    lstm_slab = jnp.concatenate(blocks, axis=0)                          # (R, 4M)

    w2t = params["w2"].T                                                 # (2M, M)
    attn_slab = jnp.concatenate([params["w1"].T, w2t[:M], w2t[M:]], axis=0)  # (3M, M)

    wfct = params["wfc"].T                                               # (M, K)
    wclt = params["wcl"].T                                               # (K, 1)
    w_head = wfct @ wclt                                                 # (M, 1)
    b_head = params["bfc"][None, :] @ wclt + params["bcl"][None, :]      # (1, 1)
    head_slab = jnp.concatenate([w_head, b_head], axis=0)                # (M+1, 1)

    return {"lstm_slab": lstm_slab, "attn_slab": attn_slab, "head_slab": head_slab}


def rppg_forward_pallas(x, h0, c0, packed, *, M, L):
    B, T, D = x.shape
    Bp = _up8(B)   # pad batch to the vreg sublane height

    # time-major input, batch zero-padded to Bp: (T*Bp, D)
    xt = jnp.pad(jnp.transpose(x, (1, 0, 2)).astype(jnp.float32),
                 ((0, 0), (0, Bp - B), (0, 0)))
    x2d = xt.reshape(T * Bp, D)
    # h0/c0 packed into one operand: (2, L, Bp, M), zero-padded batch rows
    hc0 = jnp.pad(jnp.stack([h0, c0], axis=0).astype(jnp.float32),
                  ((0, 0), (0, 0), (0, Bp - B), (0, 0)))

    layout, _ = _lstm_slab_layout(D, M, L)
    kernel = _make_kernel(Bp, T, D, M, L, layout)
    out = pl.pallas_call(
        kernel,
        out_shape=jax.ShapeDtypeStruct((Bp, 1), jnp.float32),
        in_specs=[pl.BlockSpec(memory_space=pltpu.MemorySpace.VMEM)] * 5,
        out_specs=pl.BlockSpec(memory_space=pltpu.MemorySpace.VMEM),
        # TODO(synk): for large production batches add a leading "parallel" grid axis
        # over batch (dimension_semantics=("parallel",...)) so v7x's two TensorCores
        # each take half; keep this single no-grid invocation on v5e/v6e.
    )(x2d, hc0, packed["lstm_slab"], packed["attn_slab"], packed["head_slab"])
    return out[:B]


def rppg_forward_reference(x, h0, c0, params, *, M, K, L):
    """Pure-JAX reference mirroring the PyTorch forward pass (raw params)."""
    seq = x.astype(jnp.float32)
    B, T, D = x.shape
    final_h = None
    for l in range(L):
        w_ih, w_hh, b_ih, b_hh = params["lstm"][l]
        h, c = h0[l], c0[l]
        outs = []
        for t in range(T):
            z = seq[:, t, :] @ w_ih.T + b_ih + h @ w_hh.T + b_hh
            i = jax.nn.sigmoid(z[:, 0 * M:1 * M])
            f = jax.nn.sigmoid(z[:, 1 * M:2 * M])
            g = jnp.tanh(z[:, 2 * M:3 * M])
            o = jax.nn.sigmoid(z[:, 3 * M:4 * M])
            c = f * c + i * g
            h = o * jnp.tanh(c)
            outs.append(h)
        seq = jnp.stack(outs, axis=1)
        final_h = h
    proj = jnp.einsum("btm,mn->btn", seq, params["w1"].T)
    scores = jnp.einsum("btn,bn->bt", proj, final_h)
    w = jax.nn.softmax(scores, axis=1)
    ctx = jnp.einsum("btm,bt->bm", seq, w)
    av = jnp.tanh(jnp.concatenate([ctx, final_h], axis=1) @ params["w2"].T)
    y = av @ params["wfc"].T + params["bfc"]
    return y @ params["wcl"].T + params["bcl"]


if __name__ == "__main__":
    # small config: n_inputs=D=4, n_hidden=M=32, n_outputs=K=8, n_layers=L=2
    B, T, D, M, K, L = 2, 8, 4, 32, 8, 2

    key = jax.random.PRNGKey(0)
    k_x, k_h, k_c, k_p = jax.random.split(key, 4)

    x = jax.random.normal(k_x, (B, T, D), jnp.float32)
    # deterministic stand-in for the torch.randn h0/c0 drawn inside AttnLSTM.forward
    h0 = jax.random.normal(k_h, (L, B, M), jnp.float32)
    c0 = jax.random.normal(k_c, (L, B, M), jnp.float32)

    params = init_params(k_p, D, M, K, L)
    packed = pack_params(params, D=D, M=M, K=K, L=L)

    out = rppg_forward_pallas(x, h0, c0, packed, M=M, L=L)
    out = jax.block_until_ready(out)

    ref = rppg_forward_reference(x, h0, c0, params, M=M, K=K, L=L)
    assert out.shape == (B, 1), out.shape
    assert jnp.allclose(out, ref, rtol=1e-4, atol=1e-4), (out, ref)

    print("KERNEL_OK")
</pallas_src>

<mosaic_0001>
module attributes {stable_mosaic.version = 11 : i64} {
  func.func @kernel(%arg0: memref<64x4xf32, #tpu.memory_space<vmem>>, %arg1: memref<2x2x8x32xf32, #tpu.memory_space<vmem>>, %arg2: memref<120x128xf32, #tpu.memory_space<vmem>>, %arg3: memref<96x32xf32, #tpu.memory_space<vmem>>, %arg4: memref<33x1xf32, #tpu.memory_space<vmem>>, %arg5: memref<8x1xf32, #tpu.memory_space<vmem>>) attributes {dimension_semantics = [], scalar_prefetch = 0 : i64, scratch_operands = 0 : i64, tpu.core_type = #tpu.core_type<tc>} {
    %0 = tpu.iota {dimensions = array<i32: 1>} : vector<8x128xi32>
    %c64_i32 = arith.constant 64 : i32
    %1 = vector.broadcast %c64_i32 : i32 to vector<8x128xi32>
    %2 = arith.cmpi sge, %0, %1 : vector<8x128xi32>
    %c96_i32 = arith.constant 96 : i32
    %3 = vector.broadcast %c96_i32 : i32 to vector<8x128xi32>
    %4 = arith.cmpi slt, %0, %3 : vector<8x128xi32>
    %5 = arith.andi %2, %4 : vector<8x128xi1>
    %cst = arith.constant 1.000000e+00 : f32
    %cst_0 = arith.constant 5.000000e-01 : f32
    %6 = vector.broadcast %cst : f32 to vector<8x128xf32>
    %7 = vector.broadcast %cst_0 : f32 to vector<8x128xf32>
    %8 = arith.select %5, %6, %7 : vector<8x128xi1>, vector<8x128xf32>
    %cst_1 = arith.constant 0.000000e+00 : f32
    %cst_2 = arith.constant 5.000000e-01 : f32
    %9 = vector.broadcast %cst_1 : f32 to vector<8x128xf32>
    %10 = vector.broadcast %cst_2 : f32 to vector<8x128xf32>
    %11 = arith.select %5, %9, %10 : vector<8x128xi1>, vector<8x128xf32>
    %c0 = arith.constant 0 : index
    %c0_3 = arith.constant 0 : index
    %12 = vector.load %arg0[%c0, %c0_3] : memref<64x4xf32, #tpu.memory_space<vmem>>, vector<64x4xf32>
    %c0_4 = arith.constant 0 : index
    %c0_5 = arith.constant 0 : index
    %13 = vector.load %arg2[%c0_4, %c0_5] : memref<120x128xf32, #tpu.memory_space<vmem>>, vector<4x128xf32>
    %c8 = arith.constant 8 : index
    %c0_6 = arith.constant 0 : index
    %14 = vector.load %arg2[%c8, %c0_6] : memref<120x128xf32, #tpu.memory_space<vmem>>, vector<32x128xf32>
    %c40 = arith.constant 40 : index
    %c0_7 = arith.constant 0 : index
    %15 = vector.load %arg2[%c40, %c0_7] : memref<120x128xf32, #tpu.memory_space<vmem>>, vector<1x128xf32>
    %cst_8 = arith.constant dense<0.000000e+00> : vector<64x128xf32>
    %16 = tpu.matmul %12, %13, %cst_8 {dimension_numbers = #tpu.dot_dimension_numbers<[1], [0], [0], [1], [0, 0, 1, 1], [], []>} : vector<64x4xf32>, vector<4x128xf32>, vector<64x128xf32> -> vector<64x128xf32>
    %17 = vector.broadcast %15 : vector<1x128xf32> to vector<64x128xf32>
    %18 = arith.addf %16, %17 : vector<64x128xf32>
    %c0_9 = arith.constant 0 : index
    %c0_10 = arith.constant 0 : index
    %c0_11 = arith.constant 0 : index
    %c0_12 = arith.constant 0 : index
    %19 = vector.load %arg1[%c0_9, %c0_10, %c0_11, %c0_12] : memref<2x2x8x32xf32, #tpu.memory_space<vmem>>, vector<1x1x8x32xf32>
    %20 = vector.shape_cast %19 : vector<1x1x8x32xf32> to vector<8x32xf32>
    %c1 = arith.constant 1 : index
    %c0_13 = arith.constant 0 : index
    %c0_14 = arith.constant 0 : index
    %c0_15 = arith.constant 0 : index
    %21 = vector.load %arg1[%c1, %c0_13, %c0_14, %c0_15] : memref<2x2x8x32xf32, #tpu.memory_space<vmem>>, vector<1x1x8x32xf32>
    %22 = vector.shape_cast %21 : vector<1x1x8x32xf32> to vector<8x32xf32>
    %23 = vector.extract_strided_slice %18 {offsets = [0, 0], sizes = [8, 128], strides = [1, 1]} : vector<64x128xf32> to vector<8x128xf32>
    %cst_16 = arith.constant dense<0.000000e+00> : vector<8x128xf32>
    %24 = tpu.matmul %20, %14, %cst_16 {dimension_numbers = #tpu.dot_dimension_numbers<[1], [0], [0], [1], [0, 0, 1, 1], [], []>} : vector<8x32xf32>, vector<32x128xf32>, vector<8x128xf32> -> vector<8x128xf32>
    %25 = arith.addf %23, %24 : vector<8x128xf32>
    %26 = math.tanh %25 : vector<8x128xf32>
    %27 = arith.mulf %26, %8 : vector<8x128xf32>
    %28 = arith.addf %27, %11 : vector<8x128xf32>
    %29 = vector.extract_strided_slice %28 {offsets = [0, 0], sizes = [8, 32], strides = [1, 1]} : vector<8x128xf32> to vector<8x32xf32>
    %30 = vector.extract_strided_slice %28 {offsets = [0, 32], sizes = [8, 32], strides = [1, 1]} : vector<8x128xf32> to vector<8x32xf32>
    %31 = vector.extract_strided_slice %28 {offsets = [0, 64], sizes = [8, 32], strides = [1, 1]} : vector<8x128xf32> to vector<8x32xf32>
    %32 = vector.extract_strided_slice %28 {offsets = [0, 96], sizes = [8, 32], strides = [1, 1]} : vector<8x128xf32> to vector<8x32xf32>
    %33 = arith.mulf %30, %22 : vector<8x32xf32>
    %34 = arith.mulf %29, %31 : vector<8x32xf32>
    %35 = arith.addf %33, %34 : vector<8x32xf32>
    %36 = math.tanh %35 : vector<8x32xf32>
    %37 = arith.mulf %32, %36 : vector<8x32xf32>
    %38 = vector.extract_strided_slice %18 {offsets = [8, 0], sizes = [8, 128], strides = [1, 1]} : vector<64x128xf32> to vector<8x128xf32>
    %cst_17 = arith.constant dense<0.000000e+00> : vector<8x128xf32>
    %39 = tpu.matmul %37, %14, %cst_17 {dimension_numbers = #tpu.dot_dimension_numbers<[1], [0], [0], [1], [0, 0, 1, 1], [], []>} : vector<8x32xf32>, vector<32x128xf32>, vector<8x128xf32> -> vector<8x128xf32>
    %40 = arith.addf %38, %39 : vector<8x128xf32>
    %41 = math.tanh %40 : vector<8x128xf32>
    %42 = arith.mulf %41, %8 : vector<8x128xf32>
    %43 = arith.addf %42, %11 : vector<8x128xf32>
    %44 = vector.extract_strided_slice %43 {offsets = [0, 0], sizes = [8, 32], strides = [1, 1]} : vector<8x128xf32> to vector<8x32xf32>
    %45 = vector.extract_strided_slice %43 {offsets = [0, 32], sizes = [8, 32], strides = [1, 1]} : vector<8x128xf32> to vector<8x32xf32>
    %46 = vector.extract_strided_slice %43 {offsets = [0, 64], sizes = [8, 32], strides = [1, 1]} : vector<8x128xf32> to vector<8x32xf32>
    %47 = vector.extract_strided_slice %43 {offsets = [0, 96], sizes = [8, 32], strides = [1, 1]} : vector<8x128xf32> to vector<8x32xf32>
    %48 = arith.mulf %45, %35 : vector<8x32xf32>
    %49 = arith.mulf %44, %46 : vector<8x32xf32>
    %50 = arith.addf %48, %49 : vector<8x32xf32>
    %51 = math.tanh %50 : vector<8x32xf32>
    %52 = arith.mulf %47, %51 : vector<8x32xf32>
    %53 = vector.extract_strided_slice %18 {offsets = [16, 0], sizes = [8, 128], strides = [1, 1]} : vector<64x128xf32> to vector<8x128xf32>
    %cst_18 = arith.constant dense<0.000000e+00> : vector<8x128xf32>
    %54 = tpu.matmul %52, %14, %cst_18 {dimension_numbers = #tpu.dot_dimension_numbers<[1], [0], [0], [1], [0, 0, 1, 1], [], []>} : vector<8x32xf32>, vector<32x128xf32>, vector<8x128xf32> -> vector<8x128xf32>
    %55 = arith.addf %53, %54 : vector<8x128xf32>
    %56 = math.tanh %55 : vector<8x128xf32>
    %57 = arith.mulf %56, %8 : vector<8x128xf32>
    %58 = arith.addf %57, %11 : vector<8x128xf32>
    %59 = vector.extract_strided_slice %58 {offsets = [0, 0], sizes = [8, 32], strides = [1, 1]} : vector<8x128xf32> to vector<8x32xf32>
    %60 = vector.extract_strided_slice %58 {offsets = [0, 32], sizes = [8, 32], strides = [1, 1]} : vector<8x128xf32> to vector<8x32xf32>
    %61 = vector.extract_strided_slice %58 {offsets = [0, 64], sizes = [8, 32], strides = [1, 1]} : vector<8x128xf32> to vector<8x32xf32>
    %62 = vector.extract_strided_slice %58 {offsets = [0, 96], sizes = [8, 32], strides = [1, 1]} : vector<8x128xf32> to vector<8x32xf32>
    %63 = arith.mulf %60, %50 : vector<8x32xf32>
    %64 = arith.mulf %59, %61 : vector<8x32xf32>
    %65 = arith.addf %63, %64 : vector<8x32xf32>
    %66 = math.tanh %65 : vector<8x32xf32>
    %67 = arith.mulf %62, %66 : vector<8x32xf32>
    %68 = vector.extract_strided_slice %18 {offsets = [24, 0], sizes = [8, 128], strides = [1, 1]} : vector<64x128xf32> to vector<8x128xf32>
    %cst_19 = arith.constant dense<0.000000e+00> : vector<8x128xf32>
    %69 = tpu.matmul %67, %14, %cst_19 {dimension_numbers = #tpu.dot_dimension_numbers<[1], [0], [0], [1], [0, 0, 1, 1], [], []>} : vector<8x32xf32>, vector<32x128xf32>, vector<8x128xf32> -> vector<8x128xf32>
    %70 = arith.addf %68, %69 : vector<8x128xf32>
    %71 = math.tanh %70 : vector<8x128xf32>
    %72 = arith.mulf %71, %8 : vector<8x128xf32>
    %73 = arith.addf %72, %11 : vector<8x128xf32>
    %74 = vector.extract_strided_slice %73 {offsets = [0, 0], sizes = [8, 32], strides = [1, 1]} : vector<8x128xf32> to vector<8x32xf32>
    %75 = vector.extract_strided_slice %73 {offsets = [0, 32], sizes = [8, 32], strides = [1, 1]} : vector<8x128xf32> to vector<8x32xf32>
    %76 = vector.extract_strided_slice %73 {offsets = [0, 64], sizes = [8, 32], strides = [1, 1]} : vector<8x128xf32> to vector<8x32xf32>
    %77 = vector.extract_strided_slice %73 {offsets = [0, 96], sizes = [8, 32], strides = [1, 1]} : vector<8x128xf32> to vector<8x32xf32>
    %78 = arith.mulf %75, %65 : vector<8x32xf32>
    %79 = arith.mulf %74, %76 : vector<8x32xf32>
    %80 = arith.addf %78, %79 : vector<8x32xf32>
    %81 = math.tanh %80 : vector<8x32xf32>
    %82 = arith.mulf %77, %81 : vector<8x32xf32>
    %83 = vector.extract_strided_slice %18 {offsets = [32, 0], sizes = [8, 128], strides = [1, 1]} : vector<64x128xf32> to vector<8x128xf32>
    %cst_20 = arith.constant dense<0.000000e+00> : vector<8x128xf32>
    %84 = tpu.matmul %82, %14, %cst_20 {dimension_numbers = #tpu.dot_dimension_numbers<[1], [0], [0], [1], [0, 0, 1, 1], [], []>} : vector<8x32xf32>, vector<32x128xf32>, vector<8x128xf32> -> vector<8x128xf32>
    %85 = arith.addf %83, %84 : vector<8x128xf32>
    %86 = math.tanh %85 : vector<8x128xf32>
    %87 = arith.mulf %86, %8 : vector<8x128xf32>
    %88 = arith.addf %87, %11 : vector<8x128xf32>
    %89 = vector.extract_strided_slice %88 {offsets = [0, 0], sizes = [8, 32], strides = [1, 1]} : vector<8x128xf32> to vector<8x32xf32>
    %90 = vector.extract_strided_slice %88 {offsets = [0, 32], sizes = [8, 32], strides = [1, 1]} : vector<8x128xf32> to vector<8x32xf32>
    %91 = vector.extract_strided_slice %88 {offsets = [0, 64], sizes = [8, 32], strides = [1, 1]} : vector<8x128xf32> to vector<8x32xf32>
    %92 = vector.extract_strided_slice %88 {offsets = [0, 96], sizes = [8, 32], strides = [1, 1]} : vector<8x128xf32> to vector<8x32xf32>
    %93 = arith.mulf %90, %80 : vector<8x32xf32>
    %94 = arith.mulf %89, %91 : vector<8x32xf32>
    %95 = arith.addf %93, %94 : vector<8x32xf32>
    %96 = math.tanh %95 : vector<8x32xf32>
    %97 = arith.mulf %92, %96 : vector<8x32xf32>
    %98 = vector.extract_strided_slice %18 {offsets = [40, 0], sizes = [8, 128], strides = [1, 1]} : vector<64x128xf32> to vector<8x128xf32>
    %cst_21 = arith.constant dense<0.000000e+00> : vector<8x128xf32>
    %99 = tpu.matmul %97, %14, %cst_21 {dimension_numbers = #tpu.dot_dimension_numbers<[1], [0], [0], [1], [0, 0, 1, 1], [], []>} : vector<8x32xf32>, vector<32x128xf32>, vector<8x128xf32> -> vector<8x128xf32>
    %100 = arith.addf %98, %99 : vector<8x128xf32>
    %101 = math.tanh %100 : vector<8x128xf32>
    %102 = arith.mulf %101, %8 : vector<8x128xf32>
    %103 = arith.addf %102, %11 : vector<8x128xf32>
    %104 = vector.extract_strided_slice %103 {offsets = [0, 0], sizes = [8, 32], strides = [1, 1]} : vector<8x128xf32> to vector<8x32xf32>
    %105 = vector.extract_strided_slice %103 {offsets = [0, 32], sizes = [8, 32], strides = [1, 1]} : vector<8x128xf32> to vector<8x32xf32>
    %106 = vector.extract_strided_slice %103 {offsets = [0, 64], sizes = [8, 32], strides = [1, 1]} : vector<8x128xf32> to vector<8x32xf32>
    %107 = vector.extract_strided_slice %103 {offsets = [0, 96], sizes = [8, 32], strides = [1, 1]} : vector<8x128xf32> to vector<8x32xf32>
    %108 = arith.mulf %105, %95 : vector<8x32xf32>
    %109 = arith.mulf %104, %106 : vector<8x32xf32>
    %110 = arith.addf %108, %109 : vector<8x32xf32>
    %111 = math.tanh %110 : vector<8x32xf32>
    %112 = arith.mulf %107, %111 : vector<8x32xf32>
    %113 = vector.extract_strided_slice %18 {offsets = [48, 0], sizes = [8, 128], strides = [1, 1]} : vector<64x128xf32> to vector<8x128xf32>
    %cst_22 = arith.constant dense<0.000000e+00> : vector<8x128xf32>
    %114 = tpu.matmul %112, %14, %cst_22 {dimension_numbers = #tpu.dot_dimension_numbers<[1], [0], [0], [1], [0, 0, 1, 1], [], []>} : vector<8x32xf32>, vector<32x128xf32>, vector<8x128xf32> -> vector<8x128xf32>
    %115 = arith.addf %113, %114 : vector<8x128xf32>
    %116 = math.tanh %115 : vector<8x128xf32>
    %117 = arith.mulf %116, %8 : vector<8x128xf32>
    %118 = arith.addf %117, %11 : vector<8x128xf32>
    %119 = vector.extract_strided_slice %118 {offsets = [0, 0], sizes = [8, 32], strides = [1, 1]} : vector<8x128xf32> to vector<8x32xf32>
    %120 = vector.extract_strided_slice %118 {offsets = [0, 32], sizes = [8, 32], strides = [1, 1]} : vector<8x128xf32> to vector<8x32xf32>
    %121 = vector.extract_strided_slice %118 {offsets = [0, 64], sizes = [8, 32], strides = [1, 1]} : vector<8x128xf32> to vector<8x32xf32>
    %122 = vector.extract_strided_slice %118 {offsets = [0, 96], sizes = [8, 32], strides = [1, 1]} : vector<8x128xf32> to vector<8x32xf32>
    %123 = arith.mulf %120, %110 : vector<8x32xf32>
    %124 = arith.mulf %119, %121 : vector<8x32xf32>
    %125 = arith.addf %123, %124 : vector<8x32xf32>
    %126 = math.tanh %125 : vector<8x32xf32>
    %127 = arith.mulf %122, %126 : vector<8x32xf32>
    %128 = vector.extract_strided_slice %18 {offsets = [56, 0], sizes = [8, 128], strides = [1, 1]} : vector<64x128xf32> to vector<8x128xf32>
    %cst_23 = arith.constant dense<0.000000e+00> : vector<8x128xf32>
    %129 = tpu.matmul %127, %14, %cst_23 {dimension_numbers = #tpu.dot_dimension_numbers<[1], [0], [0], [1], [0, 0, 1, 1], [], []>} : vector<8x32xf32>, vector<32x128xf32>, vector<8x128xf32> -> vector<8x128xf32>
    %130 = arith.addf %128, %129 : vector<8x128xf32>
    %131 = math.tanh %130 : vector<8x128xf32>
    %132 = arith.mulf %131, %8 : vector<8x128xf32>
    %133 = arith.addf %132, %11 : vector<8x128xf32>
    %134 = vector.extract_strided_slice %133 {offsets = [0, 0], sizes = [8, 32], strides = [1, 1]} : vector<8x128xf32> to vector<8x32xf32>
    %135 = vector.extract_strided_slice %133 {offsets = [0, 32], sizes = [8, 32], strides = [1, 1]} : vector<8x128xf32> to vector<8x32xf32>
    %136 = vector.extract_strided_slice %133 {offsets = [0, 64], sizes = [8, 32], strides = [1, 1]} : vector<8x128xf32> to vector<8x32xf32>
    %137 = vector.extract_strided_slice %133 {offsets = [0, 96], sizes = [8, 32], strides = [1, 1]} : vector<8x128xf32> to vector<8x32xf32>
    %138 = arith.mulf %135, %125 : vector<8x32xf32>
    %139 = arith.mulf %134, %136 : vector<8x32xf32>
    %140 = arith.addf %138, %139 : vector<8x32xf32>
    %141 = math.tanh %140 : vector<8x32xf32>
    %142 = arith.mulf %137, %141 : vector<8x32xf32>
    %143 = tpu.concatenate %37, %52, %67, %82, %97, %112, %127, %142 in 0 : vector<8x32xf32>, vector<8x32xf32>, vector<8x32xf32>, vector<8x32xf32>, vector<8x32xf32>, vector<8x32xf32>, vector<8x32xf32>, vector<8x32xf32> -> vector<64x32xf32>
    %c48 = arith.constant 48 : index
    %c0_24 = arith.constant 0 : index
    %144 = vector.load %arg2[%c48, %c0_24] : memref<120x128xf32, #tpu.memory_space<vmem>>, vector<32x128xf32>
    %c80 = arith.constant 80 : index
    %c0_25 = arith.constant 0 : index
    %145 = vector.load %arg2[%c80, %c0_25] : memref<120x128xf32, #tpu.memory_space<vmem>>, vector<32x128xf32>
    %c112 = arith.constant 112 : index
    %c0_26 = arith.constant 0 : index
    %146 = vector.load %arg2[%c112, %c0_26] : memref<120x128xf32, #tpu.memory_space<vmem>>, vector<1x128xf32>
    %cst_27 = arith.constant dense<0.000000e+00> : vector<64x128xf32>
    %147 = tpu.matmul %143, %144, %cst_27 {dimension_numbers = #tpu.dot_dimension_numbers<[1], [0], [0], [1], [0, 0, 1, 1], [], []>} : vector<64x32xf32>, vector<32x128xf32>, vector<64x128xf32> -> vector<64x128xf32>
    %148 = vector.broadcast %146 : vector<1x128xf32> to vector<64x128xf32>
    %149 = arith.addf %147, %148 : vector<64x128xf32>
    %c0_28 = arith.constant 0 : index
    %c1_29 = arith.constant 1 : index
    %c0_30 = arith.constant 0 : index
    %c0_31 = arith.constant 0 : index
    %150 = vector.load %arg1[%c0_28, %c1_29, %c0_30, %c0_31] : memref<2x2x8x32xf32, #tpu.memory_space<vmem>>, vector<1x1x8x32xf32>
    %151 = vector.shape_cast %150 : vector<1x1x8x32xf32> to vector<8x32xf32>
    %c1_32 = arith.constant 1 : index
    %c1_33 = arith.constant 1 : index
    %c0_34 = arith.constant 0 : index
    %c0_35 = arith.constant 0 : index
    %152 = vector.load %arg1[%c1_32, %c1_33, %c0_34, %c0_35] : memref<2x2x8x32xf32, #tpu.memory_space<vmem>>, vector<1x1x8x32xf32>
    %153 = vector.shape_cast %152 : vector<1x1x8x32xf32> to vector<8x32xf32>
    %154 = vector.extract_strided_slice %149 {offsets = [0, 0], sizes = [8, 128], strides = [1, 1]} : vector<64x128xf32> to vector<8x128xf32>
    %cst_36 = arith.constant dense<0.000000e+00> : vector<8x128xf32>
    %155 = tpu.matmul %151, %145, %cst_36 {dimension_numbers = #tpu.dot_dimension_numbers<[1], [0], [0], [1], [0, 0, 1, 1], [], []>} : vector<8x32xf32>, vector<32x128xf32>, vector<8x128xf32> -> vector<8x128xf32>
    %156 = arith.addf %154, %155 : vector<8x128xf32>
    %157 = math.tanh %156 : vector<8x128xf32>
    %158 = arith.mulf %157, %8 : vector<8x128xf32>
    %159 = arith.addf %158, %11 : vector<8x128xf32>
    %160 = vector.extract_strided_slice %159 {offsets = [0, 0], sizes = [8, 32], strides = [1, 1]} : vector<8x128xf32> to vector<8x32xf32>
    %161 = vector.extract_strided_slice %159 {offsets = [0, 32], sizes = [8, 32], strides = [1, 1]} : vector<8x128xf32> to vector<8x32xf32>
    %162 = vector.extract_strided_slice %159 {offsets = [0, 64], sizes = [8, 32], strides = [1, 1]} : vector<8x128xf32> to vector<8x32xf32>
    %163 = vector.extract_strided_slice %159 {offsets = [0, 96], sizes = [8, 32], strides = [1, 1]} : vector<8x128xf32> to vector<8x32xf32>
    %164 = arith.mulf %161, %153 : vector<8x32xf32>
    %165 = arith.mulf %160, %162 : vector<8x32xf32>
    %166 = arith.addf %164, %165 : vector<8x32xf32>
    %167 = math.tanh %166 : vector<8x32xf32>
    %168 = arith.mulf %163, %167 : vector<8x32xf32>
    %169 = vector.extract_strided_slice %149 {offsets = [8, 0], sizes = [8, 128], strides = [1, 1]} : vector<64x128xf32> to vector<8x128xf32>
    %cst_37 = arith.constant dense<0.000000e+00> : vector<8x128xf32>
    %170 = tpu.matmul %168, %145, %cst_37 {dimension_numbers = #tpu.dot_dimension_numbers<[1], [0], [0], [1], [0, 0, 1, 1], [], []>} : vector<8x32xf32>, vector<32x128xf32>, vector<8x128xf32> -> vector<8x128xf32>
    %171 = arith.addf %169, %170 : vector<8x128xf32>
    %172 = math.tanh %171 : vector<8x128xf32>
    %173 = arith.mulf %172, %8 : vector<8x128xf32>
    %174 = arith.addf %173, %11 : vector<8x128xf32>
    %175 = vector.extract_strided_slice %174 {offsets = [0, 0], sizes = [8, 32], strides = [1, 1]} : vector<8x128xf32> to vector<8x32xf32>
    %176 = vector.extract_strided_slice %174 {offsets = [0, 32], sizes = [8, 32], strides = [1, 1]} : vector<8x128xf32> to vector<8x32xf32>
    %177 = vector.extract_strided_slice %174 {offsets = [0, 64], sizes = [8, 32], strides = [1, 1]} : vector<8x128xf32> to vector<8x32xf32>
    %178 = vector.extract_strided_slice %174 {offsets = [0, 96], sizes = [8, 32], strides = [1, 1]} : vector<8x128xf32> to vector<8x32xf32>
    %179 = arith.mulf %176, %166 : vector<8x32xf32>
    %180 = arith.mulf %175, %177 : vector<8x32xf32>
    %181 = arith.addf %179, %180 : vector<8x32xf32>
    %182 = math.tanh %181 : vector<8x32xf32>
    %183 = arith.mulf %178, %182 : vector<8x32xf32>
    %184 = vector.extract_strided_slice %149 {offsets = [16, 0], sizes = [8, 128], strides = [1, 1]} : vector<64x128xf32> to vector<8x128xf32>
    %cst_38 = arith.constant dense<0.000000e+00> : vector<8x128xf32>
    %185 = tpu.matmul %183, %145, %cst_38 {dimension_numbers = #tpu.dot_dimension_numbers<[1], [0], [0], [1], [0, 0, 1, 1], [], []>} : vector<8x32xf32>, vector<32x128xf32>, vector<8x128xf32> -> vector<8x128xf32>
    %186 = arith.addf %184, %185 : vector<8x128xf32>
    %187 = math.tanh %186 : vector<8x128xf32>
    %188 = arith.mulf %187, %8 : vector<8x128xf32>
    %189 = arith.addf %188, %11 : vector<8x128xf32>
    %190 = vector.extract_strided_slice %189 {offsets = [0, 0], sizes = [8, 32], strides = [1, 1]} : vector<8x128xf32> to vector<8x32xf32>
    %191 = vector.extract_strided_slice %189 {offsets = [0, 32], sizes = [8, 32], strides = [1, 1]} : vector<8x128xf32> to vector<8x32xf32>
    %192 = vector.extract_strided_slice %189 {offsets = [0, 64], sizes = [8, 32], strides = [1, 1]} : vector<8x128xf32> to vector<8x32xf32>
    %193 = vector.extract_strided_slice %189 {offsets = [0, 96], sizes = [8, 32], strides = [1, 1]} : vector<8x128xf32> to vector<8x32xf32>
    %194 = arith.mulf %191, %181 : vector<8x32xf32>
    %195 = arith.mulf %190, %192 : vector<8x32xf32>
    %196 = arith.addf %194, %195 : vector<8x32xf32>
    %197 = math.tanh %196 : vector<8x32xf32>
    %198 = arith.mulf %193, %197 : vector<8x32xf32>
    %199 = vector.extract_strided_slice %149 {offsets = [24, 0], sizes = [8, 128], strides = [1, 1]} : vector<64x128xf32> to vector<8x128xf32>
    %cst_39 = arith.constant dense<0.000000e+00> : vector<8x128xf32>
    %200 = tpu.matmul %198, %145, %cst_39 {dimension_numbers = #tpu.dot_dimension_numbers<[1], [0], [0], [1], [0, 0, 1, 1], [], []>} : vector<8x32xf32>, vector<32x128xf32>, vector<8x128xf32> -> vector<8x128xf32>
    %201 = arith.addf %199, %200 : vector<8x128xf32>
    %202 = math.tanh %201 : vector<8x128xf32>
    %203 = arith.mulf %202, %8 : vector<8x128xf32>
    %204 = arith.addf %203, %11 : vector<8x128xf32>
    %205 = vector.extract_strided_slice %204 {offsets = [0, 0], sizes = [8, 32], strides = [1, 1]} : vector<8x128xf32> to vector<8x32xf32>
    %206 = vector.extract_strided_slice %204 {offsets = [0, 32], sizes = [8, 32], strides = [1, 1]} : vector<8x128xf32> to vector<8x32xf32>
    %207 = vector.extract_strided_slice %204 {offsets = [0, 64], sizes = [8, 32], strides = [1, 1]} : vector<8x128xf32> to vector<8x32xf32>
    %208 = vector.extract_strided_slice %204 {offsets = [0, 96], sizes = [8, 32], strides = [1, 1]} : vector<8x128xf32> to vector<8x32xf32>
    %209 = arith.mulf %206, %196 : vector<8x32xf32>
    %210 = arith.mulf %205, %207 : vector<8x32xf32>
    %211 = arith.addf %209, %210 : vector<8x32xf32>
    %212 = math.tanh %211 : vector<8x32xf32>
    %213 = arith.mulf %208, %212 : vector<8x32xf32>
    %214 = vector.extract_strided_slice %149 {offsets = [32, 0], sizes = [8, 128], strides = [1, 1]} : vector<64x128xf32> to vector<8x128xf32>
    %cst_40 = arith.constant dense<0.000000e+00> : vector<8x128xf32>
    %215 = tpu.matmul %213, %145, %cst_40 {dimension_numbers = #tpu.dot_dimension_numbers<[1], [0], [0], [1], [0, 0, 1, 1], [], []>} : vector<8x32xf32>, vector<32x128xf32>, vector<8x128xf32> -> vector<8x128xf32>
    %216 = arith.addf %214, %215 : vector<8x128xf32>
    %217 = math.tanh %216 : vector<8x128xf32>
    %218 = arith.mulf %217, %8 : vector<8x128xf32>
    %219 = arith.addf %218, %11 : vector<8x128xf32>
    %220 = vector.extract_strided_slice %219 {offsets = [0, 0], sizes = [8, 32], strides = [1, 1]} : vector<8x128xf32> to vector<8x32xf32>
    %221 = vector.extract_strided_slice %219 {offsets = [0, 32], sizes = [8, 32], strides = [1, 1]} : vector<8x128xf32> to vector<8x32xf32>
    %222 = vector.extract_strided_slice %219 {offsets = [0, 64], sizes = [8, 32], strides = [1, 1]} : vector<8x128xf32> to vector<8x32xf32>
    %223 = vector.extract_strided_slice %219 {offsets = [0, 96], sizes = [8, 32], strides = [1, 1]} : vector<8x128xf32> to vector<8x32xf32>
    %224 = arith.mulf %221, %211 : vector<8x32xf32>
    %225 = arith.mulf %220, %222 : vector<8x32xf32>
    %226 = arith.addf %224, %225 : vector<8x32xf32>
    %227 = math.tanh %226 : vector<8x32xf32>
    %228 = arith.mulf %223, %227 : vector<8x32xf32>
    %229 = vector.extract_strided_slice %149 {offsets = [40, 0], sizes = [8, 128], strides = [1, 1]} : vector<64x128xf32> to vector<8x128xf32>
    %cst_41 = arith.constant dense<0.000000e+00> : vector<8x128xf32>
    %230 = tpu.matmul %228, %145, %cst_41 {dimension_numbers = #tpu.dot_dimension_numbers<[1], [0], [0], [1], [0, 0, 1, 1], [], []>} : vector<8x32xf32>, vector<32x128xf32>, vector<8x128xf32> -> vector<8x128xf32>
    %231 = arith.addf %229, %230 : vector<8x128xf32>
    %232 = math.tanh %231 : vector<8x128xf32>
    %233 = arith.mulf %232, %8 : vector<8x128xf32>
    %234 = arith.addf %233, %11 : vector<8x128xf32>
    %235 = vector.extract_strided_slice %234 {offsets = [0, 0], sizes = [8, 32], strides = [1, 1]} : vector<8x128xf32> to vector<8x32xf32>
    %236 = vector.extract_strided_slice %234 {offsets = [0, 32], sizes = [8, 32], strides = [1, 1]} : vector<8x128xf32> to vector<8x32xf32>
    %237 = vector.extract_strided_slice %234 {offsets = [0, 64], sizes = [8, 32], strides = [1, 1]} : vector<8x128xf32> to vector<8x32xf32>
    %238 = vector.extract_strided_slice %234 {offsets = [0, 96], sizes = [8, 32], strides = [1, 1]} : vector<8x128xf32> to vector<8x32xf32>
    %239 = arith.mulf %236, %226 : vector<8x32xf32>
    %240 = arith.mulf %235, %237 : vector<8x32xf32>
    %241 = arith.addf %239, %240 : vector<8x32xf32>
    %242 = math.tanh %241 : vector<8x32xf32>
    %243 = arith.mulf %238, %242 : vector<8x32xf32>
    %244 = vector.extract_strided_slice %149 {offsets = [48, 0], sizes = [8, 128], strides = [1, 1]} : vector<64x128xf32> to vector<8x128xf32>
    %cst_42 = arith.constant dense<0.000000e+00> : vector<8x128xf32>
    %245 = tpu.matmul %243, %145, %cst_42 {dimension_numbers = #tpu.dot_dimension_numbers<[1], [0], [0], [1], [0, 0, 1, 1], [], []>} : vector<8x32xf32>, vector<32x128xf32>, vector<8x128xf32> -> vector<8x128xf32>
    %246 = arith.addf %244, %245 : vector<8x128xf32>
    %247 = math.tanh %246 : vector<8x128xf32>
    %248 = arith.mulf %247, %8 : vector<8x128xf32>
    %249 = arith.addf %248, %11 : vector<8x128xf32>
    %250 = vector.extract_strided_slice %249 {offsets = [0, 0], sizes = [8, 32], strides = [1, 1]} : vector<8x128xf32> to vector<8x32xf32>
    %251 = vector.extract_strided_slice %249 {offsets = [0, 32], sizes = [8, 32], strides = [1, 1]} : vector<8x128xf32> to vector<8x32xf32>
    %252 = vector.extract_strided_slice %249 {offsets = [0, 64], sizes = [8, 32], strides = [1, 1]} : vector<8x128xf32> to vector<8x32xf32>
    %253 = vector.extract_strided_slice %249 {offsets = [0, 96], sizes = [8, 32], strides = [1, 1]} : vector<8x128xf32> to vector<8x32xf32>
    %254 = arith.mulf %251, %241 : vector<8x32xf32>
    %255 = arith.mulf %250, %252 : vector<8x32xf32>
    %256 = arith.addf %254, %255 : vector<8x32xf32>
    %257 = math.tanh %256 : vector<8x32xf32>
    %258 = arith.mulf %253, %257 : vector<8x32xf32>
    %259 = vector.extract_strided_slice %149 {offsets = [56, 0], sizes = [8, 128], strides = [1, 1]} : vector<64x128xf32> to vector<8x128xf32>
    %cst_43 = arith.constant dense<0.000000e+00> : vector<8x128xf32>
    %260 = tpu.matmul %258, %145, %cst_43 {dimension_numbers = #tpu.dot_dimension_numbers<[1], [0], [0], [1], [0, 0, 1, 1], [], []>} : vector<8x32xf32>, vector<32x128xf32>, vector<8x128xf32> -> vector<8x128xf32>
    %261 = arith.addf %259, %260 : vector<8x128xf32>
    %262 = math.tanh %261 : vector<8x128xf32>
    %263 = arith.mulf %262, %8 : vector<8x128xf32>
    %264 = arith.addf %263, %11 : vector<8x128xf32>
    %265 = vector.extract_strided_slice %264 {offsets = [0, 0], sizes = [8, 32], strides = [1, 1]} : vector<8x128xf32> to vector<8x32xf32>
    %266 = vector.extract_strided_slice %264 {offsets = [0, 32], sizes = [8, 32], strides = [1, 1]} : vector<8x128xf32> to vector<8x32xf32>
    %267 = vector.extract_strided_slice %264 {offsets = [0, 64], sizes = [8, 32], strides = [1, 1]} : vector<8x128xf32> to vector<8x32xf32>
    %268 = vector.extract_strided_slice %264 {offsets = [0, 96], sizes = [8, 32], strides = [1, 1]} : vector<8x128xf32> to vector<8x32xf32>
    %269 = arith.mulf %266, %256 : vector<8x32xf32>
    %270 = arith.mulf %265, %267 : vector<8x32xf32>
    %271 = arith.addf %269, %270 : vector<8x32xf32>
    %272 = math.tanh %271 : vector<8x32xf32>
    %273 = arith.mulf %268, %272 : vector<8x32xf32>
    %274 = tpu.concatenate %168, %183, %198, %213, %228, %243, %258, %273 in 0 : vector<8x32xf32>, vector<8x32xf32>, vector<8x32xf32>, vector<8x32xf32>, vector<8x32xf32>, vector<8x32xf32>, vector<8x32xf32>, vector<8x32xf32> -> vector<64x32xf32>
    %c0_44 = arith.constant 0 : index
    %c0_45 = arith.constant 0 : index
    %275 = vector.load %arg3[%c0_44, %c0_45] : memref<96x32xf32, #tpu.memory_space<vmem>>, vector<32x32xf32>
    %c32 = arith.constant 32 : index
    %c0_46 = arith.constant 0 : index
    %276 = vector.load %arg3[%c32, %c0_46] : memref<96x32xf32, #tpu.memory_space<vmem>>, vector<32x32xf32>
    %c64 = arith.constant 64 : index
    %c0_47 = arith.constant 0 : index
    %277 = vector.load %arg3[%c64, %c0_47] : memref<96x32xf32, #tpu.memory_space<vmem>>, vector<32x32xf32>
    %cst_48 = arith.constant dense<0.000000e+00> : vector<64x32xf32>
    %278 = tpu.matmul %274, %275, %cst_48 {dimension_numbers = #tpu.dot_dimension_numbers<[1], [0], [0], [1], [0, 0, 1, 1], [], []>} : vector<64x32xf32>, vector<32x32xf32>, vector<64x32xf32> -> vector<64x32xf32>
    %279 = vector.shape_cast %278 : vector<64x32xf32> to vector<8x8x32xf32>
    %280 = vector.shape_cast %273 : vector<8x32xf32> to vector<1x8x32xf32>
    %281 = vector.broadcast %280 : vector<1x8x32xf32> to vector<8x8x32xf32>
    %282 = arith.mulf %279, %281 : vector<8x8x32xf32>
    %cst_49 = arith.constant dense<0.000000e+00> : vector<8x8xf32>
    %283 = vector.multi_reduction <add>, %282, %cst_49 [2] : vector<8x8x32xf32> to vector<8x8xf32>
    %284 = vector.shape_cast %283 : vector<8x8xf32> to vector<8x8x1xf32>
    %cst_50 = arith.constant dense<0xFF800000> : vector<8x1xf32>
    %285 = vector.multi_reduction <maximumf>, %284, %cst_50 [0] : vector<8x8x1xf32> to vector<8x1xf32>
    %286 = vector.shape_cast %285 : vector<8x1xf32> to vector<1x8x1xf32>
    %287 = vector.broadcast %286 : vector<1x8x1xf32> to vector<8x8x1xf32>
    %288 = arith.subf %284, %287 : vector<8x8x1xf32>
    %289 = math.exp %288 : vector<8x8x1xf32>
    %cst_51 = arith.constant dense<0.000000e+00> : vector<8x1xf32>
    %290 = vector.multi_reduction <add>, %289, %cst_51 [0] : vector<8x8x1xf32> to vector<8x1xf32>
    %291 = vector.shape_cast %290 : vector<8x1xf32> to vector<1x8x1xf32>
    %292 = vector.broadcast %291 : vector<1x8x1xf32> to vector<8x8x1xf32>
    %293 = arith.divf %289, %292 : vector<8x8x1xf32>
    %294 = vector.shape_cast %274 : vector<64x32xf32> to vector<8x8x32xf32>
    %295 = vector.broadcast %293 : vector<8x8x1xf32> to vector<8x8x32xf32>
    %296 = arith.mulf %294, %295 : vector<8x8x32xf32>
    %cst_52 = arith.constant dense<0.000000e+00> : vector<8x32xf32>
    %297 = vector.multi_reduction <add>, %296, %cst_52 [0] : vector<8x8x32xf32> to vector<8x32xf32>
    %cst_53 = arith.constant dense<0.000000e+00> : vector<8x32xf32>
    %298 = tpu.matmul %297, %276, %cst_53 {dimension_numbers = #tpu.dot_dimension_numbers<[1], [0], [0], [1], [0, 0, 1, 1], [], []>} : vector<8x32xf32>, vector<32x32xf32>, vector<8x32xf32> -> vector<8x32xf32>
    %cst_54 = arith.constant dense<0.000000e+00> : vector<8x32xf32>
    %299 = tpu.matmul %273, %277, %cst_54 {dimension_numbers = #tpu.dot_dimension_numbers<[1], [0], [0], [1], [0, 0, 1, 1], [], []>} : vector<8x32xf32>, vector<32x32xf32>, vector<8x32xf32> -> vector<8x32xf32>
    %300 = arith.addf %298, %299 : vector<8x32xf32>
    %301 = math.tanh %300 : vector<8x32xf32>
    %c0_55 = arith.constant 0 : index
    %c0_56 = arith.constant 0 : index
    %302 = vector.load %arg4[%c0_55, %c0_56] : memref<33x1xf32, #tpu.memory_space<vmem>>, vector<32x1xf32>
    %c32_57 = arith.constant 32 : index
    %c0_58 = arith.constant 0 : index
    %303 = vector.load %arg4[%c32_57, %c0_58] : memref<33x1xf32, #tpu.memory_space<vmem>>, vector<1x1xf32>
    %cst_59 = arith.constant dense<0.000000e+00> : vector<8x1xf32>
    %304 = tpu.matmul %301, %302, %cst_59 {dimension_numbers = #tpu.dot_dimension_numbers<[1], [0], [0], [1], [0, 0, 1, 1], [], []>} : vector<8x32xf32>, vector<32x1xf32>, vector<8x1xf32> -> vector<8x1xf32>
    %305 = vector.broadcast %303 : vector<1x1xf32> to vector<8x1xf32>
    %306 = arith.addf %304, %305 : vector<8x1xf32>
    %c0_60 = arith.constant 0 : index
    %c0_61 = arith.constant 0 : index
    %307 = vector.load %arg5[%c0_60, %c0_61] : memref<8x1xf32, #tpu.memory_space<vmem>>, vector<8x1xf32>
    tpu.vector_store %arg5[%c0_60, %c0_61], %306 {strides = array<i32>} : memref<8x1xf32, #tpu.memory_space<vmem>>, vector<8x1xf32>,
    return
  }
}

</mosaic_0001>

<bundles_post_ra>
// kernel: tpu_custom_call.1
= control target key start
LH: loop header
LB: loop body
LE: loop exit
PB: predicated region body
PF: predicated region fallthrough
CT: control target
= control target key end

     0   :  { %vm70_vm0 = vcmask 1043456   ;;  %vm45_vm1 = vcmask 31744   ;;  %v2840_v0 = vmov 0.0   ;;  %vm2841_vm2 = vmmov 0   ;;  %s2843_s11 = smov 64   ;;  %s2844_s14 = smov 32   ;;  %s3481_s2 = inlined_call_operand.vmem [shape: f32[120,128], index: 2, kind: input, shape index: {}]   ;;  %s3482_s0 = inlined_call_operand.vmem [shape: f32[64,4], index: 0, kind: input, shape index: {}]   ;;  %s3483_s1 = inlined_call_operand.vmem [shape: f32[2,2,8,32], index: 1, kind: input, shape index: {}]   ;;  %s3484_s3 = inlined_call_operand.vmem [shape: f32[96,32], index: 3, kind: input, shape index: {}]   ;;  %s3485_s4 = inlined_call_operand.vmem [shape: f32[33,1], index: 4, kind: input, shape index: {}]   ;;  %s3486_s5 = inlined_call_operand.vmem [shape: f32[8,1], index: 5, kind: output, shape index: {}]  }
   0x1   :  { %2502 = vmatprep.subr.mxu1 %v2840_v0  ;;  %v35_v1 = vld [vmem:[%s3481_s2] sm:$0xf]  ;;  %2510 = vmatprep.mubr.msk.f32.mxu1 %vm2841_vm2, %v2840_v0  ;;  %v28_v4 = vld [vmem:[%s3482_s0 + $0x8] sm:$0xff]  ;;  %v2896_v5 = vld [vmem:[%s3481_s2 + $0x18] sm:$0xff]  ;;  %vm182_vm3 = vcmask 261120   ;;  %v20_v14 = vlaneseq  ;;  %v2842_v18 = vmov 0.5  }
   0x2   :  { %v2882_v2 = vld [vmem:[%s3481_s2 + $0x20] sm:$0xff]  ;;  %2488 = vmatprep.subr.msk.mxu0 %vm70_vm0, %v35_v1  ;;  %v2904_v6 = vld [vmem:[%s3481_s2 + $0x10] sm:$0xff]  ;;  %v2912_v7 = vld [vmem:[%s3481_s2 + $0x8] sm:$0xff]  ;;  %vm2060_vm7 = vcmask 1048320   ;;  %vm2304_vm8 = vcmask 7168  }
   0x3   :  { %v27_v3 = vld [vmem:[%s3482_s0] sm:$0xff]  ;;  %2503 = vmatpush3.msra.mxu1 %v2882_v2  ;;  %2489 = vmatpush3.msk.msra.mxu0 %vm70_vm0, %v35_v1  ;;  %v2943_v10 = vld [vmem:[%s3481_s2 + $0x28] ss:$0 sm:$0xff]  ;;  %v21_v17 = vand.u32 127, %v20_v14  ;;  %v2320_v24 = vld [vmem:[%s3483_s1 + $0x10] sm:$0xff] }
   0x4   :  { %2490 = vmatprep.mubr.msk.f32.mxu0 %vm45_vm1, %v27_v3  ;;  %2504 = vmatprep.subr.mxu1 %v2840_v0  ;;  %v179_v8 = vld [vmem:[%s3483_s1] sm:$0xff]  ;;  %v29_v47 = vld [vmem:[%s3482_s0 + $0x10] sm:$0xff]  ;;  %v30_v48 = vld [vmem:[%s3482_s0 + $0x18] sm:$0xff] }
   0x5   :  { %2491 = vmatmul.mubr.msk.f32.vlgmr.msra.gmra.mxu0 %vm45_vm1, %v28_v4  ;;  %2505 = vmatpush3.msra.mxu1 %v2896_v5  ;;  %vm22_vm4 = vcmp.ge.s32.totalorder %v21_v17, 64  ;;  %vm23_vm5 = vcmp.lt.s32.totalorder %v21_v17, 96  ;;  %v31_v49 = vld [vmem:[%s3482_s0 + $0x20] sm:$0xff]  ;;  %v32_v50 = vld [vmem:[%s3482_s0 + $0x28] sm:$0xff]  ;;  %v33_v51 = vld [vmem:[%s3482_s0 + $0x30] sm:$0xff] }
   0x6   :  { %2524 = vmatprep.subr.mxu0 %v2840_v0  ;;  %2506 = vmatprep.subr.mxu1 %v2840_v0  ;;  %vm24_vm6 = vmand %vm22_vm4, %vm23_vm5  ;;  %v34_v52 = vld [vmem:[%s3482_s0 + $0x38] sm:$0xff] }
   0x7   :  { %2525 = vmatpush3.msra.mxu0 %v2882_v2  ;;  %2507 = vmatpush3.msra.mxu1 %v2904_v6  ;;  %v2946_v19 = vsel %vm24_vm6, 1.0, %v2842_v18  ;;  %v2948_v21 = vsel %vm24_vm6, 0.0, %v2842_v18 }
   0x8   :  { %2526 = vmatprep.subr.mxu0 %v2840_v0  ;;  %2508 = vmatprep.subr.mxu1 %v2840_v0 }
   0x9   :  { %2527 = vmatpush3.msra.mxu0 %v2896_v5  ;;  %2509 = vmatpush3.msra.mxu1 %v2912_v7 }
   0xa   :  { %2528 = vmatprep.subr.mxu0 %v2840_v0  ;;  %2511 = vmatmul.mubr.msk.f32.vlgmr.msra.gmra.mxu1 %vm182_vm3, %v179_v8 }
   0xb   :  { %2513 = vmatprep.subr.mxu1 %v2840_v0  ;;  %2521 = vmatprep.mubr.msk.f32.mxu1 %vm2841_vm2, %v2840_v0 }
   0xc   :  { %2514 = vmatpush3.msra.mxu1 %v2882_v2  ;;  %2529 = vmatpush3.msra.mxu0 %v2904_v6 }
   0xd   :  { %2515 = vmatprep.subr.mxu1 %v2840_v0  ;;  %2530 = vmatprep.subr.mxu0 %v2840_v0 }
   0xe   :  { %2516 = vmatpush3.msra.mxu1 %v2896_v5  ;;  %2531 = vmatpush3.msra.mxu0 %v2912_v7 }
   0xf   :  { %2517 = vmatprep.subr.mxu1 %v2840_v0  ;;  %2546 = vmatprep.subr.mxu0 %v2840_v0 }
  0x10   :  { %2518 = vmatpush3.msra.mxu1 %v2904_v6  ;;  %2493 = vmatprep.mubr.msk.f32.mxu0 %vm45_vm1, %v29_v47 }
  0x11   :  { %2519 = vmatprep.subr.mxu1 %v2840_v0  ;;  %2494 = vmatmul.mubr.msk.f32.gmra.mxu0 %vm45_vm1, %v30_v48 }
  0x12   :  { %2520 = vmatpush3.msra.mxu1 %v2912_v7  ;;  %2496 = vmatprep.mubr.msk.f32.mxu0 %vm45_vm1, %v31_v49 }
  0x13   :  { %2535 = vmatprep.subr.mxu1 %v2840_v0 }
  0x15   :  { %2497 = vmatmul.mubr.msk.f32.gmra.mxu0 %vm45_vm1, %v32_v50 }
  0x16   :  { %2499 = vmatprep.mubr.msk.f32.mxu0 %vm45_vm1, %v33_v51 }
  0x19   :  { %2500 = vmatmul.mubr.msk.f32.gmra.mxu0 %vm45_vm1, %v34_v52 }
  0x1a   :  { %2532 = vmatprep.mubr.msk.f32.mxu0 %vm2841_vm2, %v2840_v0 }
  0xc5   :  { %v2492_v9 = vpop.f32.mrf.mxu0 }
  0xc6   :  { %v146_v35 = vadd.f32 %v2492_v9, %v2943_v10 }
  0xc7   :  { %v140_v11 = vpop.f32.mrf.mxu0 }
  0xc8   :  { %v141_v12 = vadd.f32 %v2943_v10, %v140_v11 }
  0xca   :  { %v252_v13 = vpop.f32.mrf.mxu1 }
  0xcb   :  { %v256_v15 = vadd.f32 %v252_v13, %v141_v12 }
  0xcc   :  { %v2512_v16 = vpop.f32.mrf.mxu1 }
  0xcd   :  { %2756 = vtanh.f32 %v256_v15 }
  0xd1   :  { %v2495_v57 = vpop.f32.mrf.mxu0 }
  0xd3   :  { %v150_v58 = vpop.f32.mrf.mxu0 }
  0xd4   :  { %v151_v63 = vadd.f32 %v2943_v10, %v150_v58 }
  0xd5   :  { %v3021_v59 = vpop.f32.mrf.mxu0 }
  0xd7   :  { %v3023_v60 = vpop.f32.mrf.mxu0 }
  0xd9   :  { %v3025_v61 = vpop.f32.mrf.mxu0 }
  0xda   :  { %v2757_v20 = vpop.eup %2756 }
  0xdb   :  { %v258_v22 = vmul.f32 %v2757_v20, %v2946_v19  ;;  %v3027_v62 = vpop.f32.mrf.mxu0 }
  0xdd   :  { %v259_v23 = vadd.f32 %v258_v22, %v2948_v21 }
  0xdf   :  { %266 = vrot.lane.b32.xlu0 %v259_v23, %s2843_s11 }
  0xe3   :  { %261 = vrot.lane.b32.xlu0 %v2320_v24, %s2844_s14 }
 0x151   :  { %v267_v25 = vpop.permute.xlu0 %266 }
 0x152   :  { %v269_v26 = vmul.f32 %v267_v25, %v259_v23 }
 0x154   :  { %271 = vrot.lane.b32.xlu1 %v269_v26, %s2844_s14 }
 0x155   :  { %v262_v27 = vpop.permute.xlu0 %261 }
 0x156   :  { %v264_v28 = vmul.f32 %v262_v27, %v259_v23 }
 0x1c6   :  { %v272_v29 = vpop.permute.xlu1 %271 }
 0x1c7   :  { %v274_v30 = vadd.f32 %v272_v29, %v264_v28 }
 0x1c9   :  { %2758 = vtanh.f32 %v274_v30 }
 0x1d6   :  { %v2759_v31 = vpop.eup %2758 }
 0x1d7   :  { %277 = vrot.lane.b32.xlu1 %v2759_v31, %s2843_s11 }
 0x249   :  { %v278_v32 = vpop.permute.xlu1 %277 }
 0x24a   :  { %v280_v33 = vmul.f32 %v278_v32, %v259_v23  ;;  %v156_v23 = vadd.f32 %v2495_v57, %v2943_v10 }
 0x24c   :  { %282 = vrot.lane.b32.xlu0 %v280_v33, %s2844_s14 }
 0x2be   :  { %v2960_v34 = vpop.permute.xlu0 %282 }
 0x2bf   :  { %2522 = vmatmul.mubr.msk.f32.vlgmr.msra.gmra.mxu1 %vm182_vm3, %v2960_v34 }
 0x2c0   :  { %2536 = vmatpush3.msra.mxu1 %v2882_v2  ;;  %2543 = vmatprep.mubr.msk.f32.mxu1 %vm2841_vm2, %v2840_v0 }
 0x2c1   :  { %2537 = vmatprep.subr.mxu1 %v2840_v0 }
 0x2c2   :  { %2538 = vmatpush3.msra.mxu1 %v2896_v5 }
 0x2c3   :  { %2539 = vmatprep.subr.mxu1 %v2840_v0 }
 0x2c4   :  { %2540 = vmatpush3.msra.mxu1 %v2904_v6 }
 0x2c5   :  { %2541 = vmatprep.subr.mxu1 %v2840_v0 }
 0x2c6   :  { %2542 = vmatpush3.msra.mxu1 %v2912_v7 }
 0x2c7   :  { %2557 = vmatprep.subr.mxu1 %v2840_v0 }
 0x37f   :  { %v352_v36 = vpop.f32.mrf.mxu1 }
 0x380   :  { %v356_v37 = vadd.f32 %v352_v36, %v146_v35 }
 0x381   :  { %v2523_v38 = vpop.f32.mrf.mxu1 }
 0x382   :  { %2760 = vtanh.f32 %v356_v37 }
 0x38f   :  { %v2761_v39 = vpop.eup %2760 }
 0x390   :  { %v358_v40 = vmul.f32 %v2761_v39, %v2946_v19 }
 0x392   :  { %v359_v41 = vadd.f32 %v358_v40, %v2948_v21  ;;  %v161_v40 = vadd.f32 %v2943_v10, %v3023_v60 }
 0x394   :  { %362 = vrot.lane.b32.xlu1 %v359_v41, %s2843_s11  ;;  %v360_v44 = vmul.f32 %v359_v41, %v274_v30 }
 0x406   :  { %v363_v42 = vpop.permute.xlu1 %362 }
 0x407   :  { %v365_v43 = vmul.f32 %v363_v42, %v359_v41 }
 0x409   :  { %367 = vrot.lane.b32.xlu0 %v365_v43, %s2844_s14 }
 0x47b   :  { %v368_v45 = vpop.permute.xlu0 %367 }
 0x47c   :  { %v370_v46 = vadd.f32 %v368_v45, %v360_v44 }
 0x47e   :  { %2762 = vtanh.f32 %v370_v46 }
 0x48b   :  { %v2763_v53 = vpop.eup %2762 }
 0x48c   :  { %373 = vrot.lane.b32.xlu1 %v2763_v53, %s2843_s11 }
 0x4fe   :  { %v374_v54 = vpop.permute.xlu1 %373 }
 0x4ff   :  { %v376_v55 = vmul.f32 %v374_v54, %v359_v41 }
 0x501   :  { %378 = vrot.lane.b32.xlu0 %v376_v55, %s2844_s14 }
 0x573   :  { %v3007_v56 = vpop.permute.xlu0 %378 }
 0x574   :  { %2533 = vmatmul.mubr.msk.f32.vlgmr.msra.gmra.mxu0 %vm182_vm3, %v3007_v56 }
 0x575   :  { %2547 = vmatpush3.msra.mxu0 %v2882_v2  ;;  %2554 = vmatprep.mubr.msk.f32.mxu0 %vm2841_vm2, %v2840_v0 }
 0x576   :  { %2548 = vmatprep.subr.mxu0 %v2840_v0 }
 0x577   :  { %2549 = vmatpush3.msra.mxu0 %v2896_v5 }
 0x578   :  { %2550 = vmatprep.subr.mxu0 %v2840_v0 }
 0x579   :  { %2551 = vmatpush3.msra.mxu0 %v2904_v6 }
 0x57a   :  { %2552 = vmatprep.subr.mxu0 %v2840_v0 }
 0x57b   :  { %2553 = vmatpush3.msra.mxu0 %v2912_v7 }
 0x57c   :  { %2568 = vmatprep.subr.mxu0 %v2840_v0 }
 0x634   :  { %v448_v1 = vpop.f32.mrf.mxu0 }
 0x635   :  { %v452_v3 = vadd.f32 %v448_v1, %v151_v63 }
 0x636   :  { %v2534_v4 = vpop.f32.mrf.mxu0 }
 0x637   :  { %2764 = vtanh.f32 %v452_v3 }
 0x644   :  { %v2765_v8 = vpop.eup %2764 }
 0x645   :  { %v454_v9 = vmul.f32 %v2765_v8, %v2946_v19 }
 0x647   :  { %v455_v11 = vadd.f32 %v454_v9, %v2948_v21 }
 0x649   :  { %458 = vrot.lane.b32.xlu1 %v455_v11, %s2843_s11  ;;  %v456_v14 = vmul.f32 %v455_v11, %v370_v46 }
 0x6bb   :  { %v459_v12 = vpop.permute.xlu1 %458 }
 0x6bc   :  { %v461_v13 = vmul.f32 %v459_v12, %v455_v11 }
 0x6be   :  { %463 = vrot.lane.b32.xlu0 %v461_v13, %s2844_s14 }
 0x730   :  { %v464_v15 = vpop.permute.xlu0 %463 }
 0x731   :  { %v466_v16 = vadd.f32 %v464_v15, %v456_v14  ;;  %v955_v14 = vld [vmem:[%s3481_s2 + $0x40] sm:$0xff]  ;;  %v954_v15 = vld [vmem:[%s3481_s2 + $0x38] sm:$0xff] }
 0x733   :  { %2766 = vtanh.f32 %v466_v16 }
 0x740   :  { %v2767_v17 = vpop.eup %2766 }
 0x741   :  { %469 = vrot.lane.b32.xlu1 %v2767_v17, %s2843_s11 }
 0x7b3   :  { %v470_v18 = vpop.permute.xlu1 %469 }
 0x7b4   :  { %v472_v20 = vmul.f32 %v470_v18, %v455_v11 }
 0x7b6   :  { %474 = vrot.lane.b32.xlu0 %v472_v20, %s2844_s14 }
 0x828   :  { %v3036_v22 = vpop.permute.xlu0 %474 }
 0x829   :  { %2544 = vmatmul.mubr.msk.f32.vlgmr.msra.gmra.mxu1 %vm182_vm3, %v3036_v22 }
 0x82a   :  { %2558 = vmatpush3.msra.mxu1 %v2882_v2  ;;  %2565 = vmatprep.mubr.msk.f32.mxu1 %vm2841_vm2, %v2840_v0 }
 0x82b   :  { %2559 = vmatprep.subr.mxu1 %v2840_v0 }
 0x82c   :  { %2560 = vmatpush3.msra.mxu1 %v2896_v5 }
 0x82d   :  { %2561 = vmatprep.subr.mxu1 %v2840_v0 }
 0x82e   :  { %2562 = vmatpush3.msra.mxu1 %v2904_v6 }
 0x82f   :  { %2563 = vmatprep.subr.mxu1 %v2840_v0 }
 0x830   :  { %2564 = vmatpush3.msra.mxu1 %v2912_v7 }
 0x831   :  { %2579 = vmatprep.subr.mxu1 %v2840_v0 }
 0x8e9   :  { %v544_v24 = vpop.f32.mrf.mxu1 }
 0x8ea   :  { %v548_v25 = vadd.f32 %v544_v24, %v156_v23 }
 0x8eb   :  { %v2545_v26 = vpop.f32.mrf.mxu1 }
 0x8ec   :  { %2768 = vtanh.f32 %v548_v25 }
 0x8f9   :  { %v2769_v27 = vpop.eup %2768 }
 0x8fa   :  { %v550_v28 = vmul.f32 %v2769_v27, %v2946_v19 }
 0x8fc   :  { %v551_v29 = vadd.f32 %v550_v28, %v2948_v21 }
 0x8fe   :  { %554 = vrot.lane.b32.xlu1 %v551_v29, %s2843_s11  ;;  %v552_v32 = vmul.f32 %v551_v29, %v466_v16  ;;  %v953_v16 = vld [vmem:[%s3481_s2 + $0x30] sm:$0xff] }
 0x970   :  { %v555_v30 = vpop.permute.xlu1 %554 }
 0x971   :  { %v557_v31 = vmul.f32 %v555_v30, %v551_v29  ;;  %v3140_v30 = vld [vmem:[%s3481_s2 + $0x60] sm:$0xff] }
 0x973   :  { %559 = vrot.lane.b32.xlu0 %v557_v31, %s2844_s14  ;;  %v3147_v31 = vld [vmem:[%s3481_s2 + $0x58] sm:$0xff] }
 0x9e5   :  { %v560_v33 = vpop.permute.xlu0 %559 }
 0x9e6   :  { %v562_v35 = vadd.f32 %v560_v33, %v552_v32  ;;  %v3154_v32 = vld [vmem:[%s3481_s2 + $0x50] sm:$0xff] }
 0x9e8   :  { %2770 = vtanh.f32 %v562_v35 }
 0x9f5   :  { %v2771_v36 = vpop.eup %2770 }
 0x9f6   :  { %565 = vrot.lane.b32.xlu1 %v2771_v36, %s2843_s11  ;;  %v2339_v36 = vld [vmem:[%s3483_s1 + $0x18] sm:$0xff] }
 0xa68   :  { %v566_v37 = vpop.permute.xlu1 %565 }
 0xa69   :  { %v568_v38 = vmul.f32 %v566_v37, %v551_v29  ;;  %v3134_v29 = vld [vmem:[%s3481_s2 + $0x68] sm:$0xff] }
 0xa6b   :  { %570 = vrot.lane.b32.xlu0 %v568_v38, %s2844_s14  ;;  %v2338_v38 = vld [vmem:[%s3483_s1 + $0x8] sm:$0xff] }
 0xadd   :  { %v3057_v39 = vpop.permute.xlu0 %570 }
 0xade   :  { %2555 = vmatmul.mubr.msk.f32.vlgmr.msra.gmra.mxu0 %vm182_vm3, %v3057_v39 }
 0xadf   :  { %2569 = vmatpush3.msra.mxu0 %v2882_v2  ;;  %2576 = vmatprep.mubr.msk.f32.mxu0 %vm2841_vm2, %v2840_v0 }
 0xae0   :  { %2570 = vmatprep.subr.mxu0 %v2840_v0 }
 0xae1   :  { %2571 = vmatpush3.msra.mxu0 %v2896_v5 }
 0xae2   :  { %2572 = vmatprep.subr.mxu0 %v2840_v0 }
 0xae3   :  { %2573 = vmatpush3.msra.mxu0 %v2904_v6 }
 0xae4   :  { %2574 = vmatprep.subr.mxu0 %v2840_v0 }
 0xae5   :  { %2575 = vmatpush3.msra.mxu0 %v2912_v7 }
 0xb9e   :  { %v640_v41 = vpop.f32.mrf.mxu0 }
 0xb9f   :  { %v644_v42 = vadd.f32 %v640_v41, %v161_v40 }
 0xba0   :  { %v2556_v43 = vpop.f32.mrf.mxu0 }
 0xba1   :  { %2772 = vtanh.f32 %v644_v42 }
 0xbae   :  { %v2773_v44 = vpop.eup %2772 }
 0xbaf   :  { %v646_v45 = vmul.f32 %v2773_v44, %v2946_v19 }
 0xbb1   :  { %v647_v46 = vadd.f32 %v646_v45, %v2948_v21  ;;  %v3195_v45 = vld [vmem:[%s3481_s2 + $0x70] ss:$0 sm:$0xff] }
 0xbb3   :  { %650 = vrot.lane.b32.xlu1 %v647_v46, %s2843_s11  ;;  %v648_v49 = vmul.f32 %v647_v46, %v562_v35 }
 0xc25   :  { %v651_v47 = vpop.permute.xlu1 %650 }
 0xc26   :  { %v653_v48 = vmul.f32 %v651_v47, %v647_v46 }
 0xc28   :  { %655 = vrot.lane.b32.xlu0 %v653_v48, %s2844_s14 }
 0xc9a   :  { %v656_v50 = vpop.permute.xlu0 %655 }
 0xc9b   :  { %v658_v51 = vadd.f32 %v656_v50, %v648_v49 }
 0xc9d   :  { %2774 = vtanh.f32 %v658_v51 }
 0xcaa   :  { %v2775_v52 = vpop.eup %2774 }
 0xcab   :  { %661 = vrot.lane.b32.xlu1 %v2775_v52, %s2843_s11 }
 0xd1d   :  { %v662_v53 = vpop.permute.xlu1 %661 }
 0xd1e   :  { %v664_v54 = vmul.f32 %v662_v53, %v647_v46 }
 0xd20   :  { %666 = vrot.lane.b32.xlu0 %v664_v54, %s2844_s14 }
 0xd92   :  { %v667_v55 = vpop.permute.xlu0 %666 }
 0xd93   :  { %2566 = vmatmul.mubr.msk.f32.vlgmr.msra.gmra.mxu1 %vm182_vm3, %v667_v55 }
 0xd94   :  { %2580 = vmatpush3.msra.mxu1 %v2882_v2  ;;  %2587 = vmatprep.mubr.msk.f32.mxu1 %vm2841_vm2, %v2840_v0  ;;  %v166_v2 = vadd.f32 %v3021_v59, %v2943_v10  ;;  %v956_v59 = vld [vmem:[%s3481_s2 + $0x48] sm:$0xff] }
 0xd95   :  { %2581 = vmatprep.subr.mxu1 %v2840_v0  ;;  %2590 = vmatprep.subr.mxu0 %v956_v59 }
 0xd96   :  { %2582 = vmatpush3.msra.mxu1 %v2896_v5 }
 0xd97   :  { %2583 = vmatprep.subr.mxu1 %v2840_v0 }
 0xd98   :  { %2584 = vmatpush3.msra.mxu1 %v2904_v6 }
 0xd99   :  { %2585 = vmatprep.subr.mxu1 %v2840_v0 }
 0xd9a   :  { %2586 = vmatpush3.msra.mxu1 %v2912_v7 }
 0xd9b   :  { %2610 = vmatprep.subr.mxu1 %v2840_v0 }
 0xe53   :  { %v736_v57 = vpop.f32.mrf.mxu1 }
 0xe54   :  { %v740_v58 = vadd.f32 %v736_v57, %v166_v2 }
 0xe55   :  { %v2567_v60 = vpop.f32.mrf.mxu1 }
 0xe56   :  { %2776 = vtanh.f32 %v740_v58 }
 0xe63   :  { %v2777_v63 = vpop.eup %2776 }
 0xe64   :  { %v742_v5 = vmul.f32 %v2777_v63, %v2946_v19 }
 0xe66   :  { %v743_v1 = vadd.f32 %v742_v5, %v2948_v21 }
 0xe68   :  { %746 = vrot.lane.b32.xlu1 %v743_v1, %s2843_s11  ;;  %v744_v7 = vmul.f32 %v743_v1, %v658_v51 }
 0xeda   :  { %v747_v6 = vpop.permute.xlu1 %746 }
 0xedb   :  { %v749_v3 = vmul.f32 %v747_v6, %v743_v1 }
 0xedd   :  { %751 = vrot.lane.b32.xlu0 %v749_v3, %s2844_s14 }
 0xf4f   :  { %v752_v4 = vpop.permute.xlu0 %751 }
 0xf50   :  { %v754_v8 = vadd.f32 %v752_v4, %v744_v7 }
 0xf52   :  { %2778 = vtanh.f32 %v754_v8 }
 0xf5f   :  { %v2779_v9 = vpop.eup %2778 }
 0xf60   :  { %757 = vrot.lane.b32.xlu1 %v2779_v9, %s2843_s11 }
 0xfd2   :  { %v758_v11 = vpop.permute.xlu1 %757 }
 0xfd3   :  { %v760_v12 = vmul.f32 %v758_v11, %v743_v1 }
 0xfd5   :  { %762 = vrot.lane.b32.xlu0 %v760_v12, %s2844_s14 }
0x1047   :  { %v763_v13 = vpop.permute.xlu0 %762 }
0x1048   :  { %2577 = vmatmul.mubr.msk.f32.vlgmr.msra.gmra.mxu0 %vm182_vm3, %v763_v13 }
0x1049   :  { %2591 = vmatpush3.msra.mxu0 %v956_v59  ;;  %2598 = vmatprep.mubr.msk.f32.mxu0 %vm182_vm3, %v2960_v34  ;;  %v171_v34 = vadd.f32 %v2943_v10, %v3027_v62 }
0x104a   :  { %2592 = vmatprep.subr.mxu0 %v955_v14 }
0x104b   :  { %2593 = vmatpush3.msra.mxu0 %v955_v14 }
0x104c   :  { %2594 = vmatprep.subr.mxu0 %v954_v15 }
0x104d   :  { %2595 = vmatpush3.msra.mxu0 %v954_v15 }
0x104e   :  { %2596 = vmatprep.subr.mxu0 %v953_v16 }
0x104f   :  { %2597 = vmatpush3.msra.mxu0 %v953_v16 }
0x1050   :  { %2599 = vmatmul.mubr.msk.f32.vlgmr.msra.gmra.mxu0 %vm182_vm3, %v3007_v56  ;;  %2632 = vmatprep.subr.mxu0 %v2840_v0 }
0x1051   :  { %2601 = vmatprep.mubr.msk.f32.mxu0 %vm182_vm3, %v3036_v22  ;;  %2633 = vmatpush3.msra.mxu0 %v3134_v29 }
0x1052   :  { %2634 = vmatprep.subr.mxu0 %v2840_v0 }
0x1053   :  { %2635 = vmatpush3.msra.mxu0 %v3140_v30 }
0x1054   :  { %2602 = vmatmul.mubr.msk.f32.gmra.mxu0 %vm182_vm3, %v3057_v39  ;;  %2636 = vmatprep.subr.mxu0 %v2840_v0  ;;  %v176_v39 = vadd.f32 %v3025_v61, %v2943_v10 }
0x1055   :  { %2604 = vmatprep.mubr.msk.f32.mxu0 %vm182_vm3, %v667_v55  ;;  %2637 = vmatpush3.msra.mxu0 %v3147_v31 }
0x1056   :  { %2638 = vmatprep.subr.mxu0 %v2840_v0 }
0x1057   :  { %2639 = vmatpush3.msra.mxu0 %v3154_v32 }
0x1058   :  { %2605 = vmatmul.mubr.msk.f32.gmra.mxu0 %vm182_vm3, %v763_v13  ;;  %2654 = vmatprep.subr.mxu0 %v2840_v0 }
0x1108   :  { %v832_v17 = vpop.f32.mrf.mxu0 }
0x1109   :  { %v836_v18 = vadd.f32 %v832_v17, %v171_v34 }
0x110a   :  { %v2578_v20 = vpop.f32.mrf.mxu0 }
0x110b   :  { %2780 = vtanh.f32 %v836_v18 }
0x1110   :  { %v2600_v40 = vpop.f32.mrf.mxu0 }
0x1111   :  { %v1043_v13 = vadd.f32 %v2600_v40, %v3195_v45 }
0x1112   :  { %v1037_v44 = vpop.f32.mrf.mxu0 }
0x1113   :  { %v1038_v46 = vadd.f32 %v3195_v45, %v1037_v44 }
0x1118   :  { %v2781_v56 = vpop.eup %2780 }
0x1119   :  { %v838_v23 = vmul.f32 %v2781_v56, %v2946_v19 }
0x111b   :  { %v839_v24 = vadd.f32 %v838_v23, %v2948_v21 }
0x111d   :  { %842 = vrot.lane.b32.xlu1 %v839_v24, %s2843_s11  ;;  %v840_v26 = vmul.f32 %v839_v24, %v754_v8 }
0x118f   :  { %v843_v22 = vpop.permute.xlu1 %842 }
0x1190   :  { %v845_v25 = vmul.f32 %v843_v22, %v839_v24 }
0x1192   :  { %847 = vrot.lane.b32.xlu0 %v845_v25, %s2844_s14 }
0x1204   :  { %v848_v27 = vpop.permute.xlu0 %847 }
0x1205   :  { %v3127_v28 = vadd.f32 %v848_v27, %v840_v26 }
0x1207   :  { %2782 = vtanh.f32 %v3127_v28 }
0x1214   :  { %v2783_v62 = vpop.eup %2782 }
0x1215   :  { %853 = vrot.lane.b32.xlu1 %v2783_v62, %s2843_s11 }
0x1287   :  { %v854_v33 = vpop.permute.xlu1 %853 }
0x1288   :  { %v856_v35 = vmul.f32 %v854_v33, %v839_v24  ;;  %v2603_v33 = vpop.f32.mrf.mxu0 }
0x128a   :  { %858 = vrot.lane.b32.xlu0 %v856_v35, %s2844_s14  ;;  %v1047_v35 = vpop.f32.mrf.mxu0 }
0x128b   :  { %v1048_v40 = vadd.f32 %v3195_v45, %v1047_v35 }
0x128e   :  { %1158 = vrot.lane.b32.xlu0 %v2339_v36, %s2844_s14  ;;  %v3255_v36 = vpop.f32.mrf.mxu0 }
0x12fc   :  { %v859_v37 = vpop.permute.xlu0 %858 }
0x12fd   :  { %2588 = vmatmul.mubr.msk.f32.vlgmr.msra.gmra.mxu1 %vm182_vm3, %v859_v37  ;;  %2607 = vmatprep.mubr.msk.f32.mxu0 %vm182_vm3, %v859_v37  ;;  %v3257_v37 = vpop.f32.mrf.mxu0 }
0x12fe   :  { %2611 = vmatpush3.msra.mxu1 %v3134_v29  ;;  %2618 = vmatprep.mubr.msk.f32.mxu1 %vm2841_vm2, %v2840_v0 }
0x12ff   :  { %2612 = vmatprep.subr.mxu1 %v2840_v0 }
0x1300   :  { %2613 = vmatpush3.msra.mxu1 %v3140_v30  ;;  %v1159_v53 = vpop.permute.xlu0 %1158 }
0x1301   :  { %2614 = vmatprep.subr.mxu1 %v2840_v0 }
0x1302   :  { %2615 = vmatpush3.msra.mxu1 %v3147_v31 }
0x1303   :  { %2616 = vmatprep.subr.mxu1 %v2840_v0 }
0x1304   :  { %2617 = vmatpush3.msra.mxu1 %v3154_v32 }
0x1305   :  { %2619 = vmatmul.mubr.msk.f32.vlgmr.msra.gmra.mxu1 %vm182_vm3, %v2338_v38  ;;  %2621 = vmatprep.subr.mxu1 %v2840_v0 }
0x1306   :  { %2622 = vmatpush3.msra.mxu1 %v3134_v29  ;;  %2629 = vmatprep.mubr.msk.f32.mxu1 %vm2841_vm2, %v2840_v0 }
0x1307   :  { %2623 = vmatprep.subr.mxu1 %v2840_v0 }
0x1308   :  { %2624 = vmatpush3.msra.mxu1 %v3140_v30 }
0x1309   :  { %2625 = vmatprep.subr.mxu1 %v2840_v0 }
0x130a   :  { %2626 = vmatpush3.msra.mxu1 %v3147_v31 }
0x130b   :  { %2627 = vmatprep.subr.mxu1 %v2840_v0 }
0x130c   :  { %2628 = vmatpush3.msra.mxu1 %v3154_v32 }
0x130d   :  { %2643 = vmatprep.subr.mxu1 %v2840_v0 }
0x13bd   :  { %v928_v41 = vpop.f32.mrf.mxu1 }
0x13be   :  { %v932_v42 = vadd.f32 %v928_v41, %v176_v39 }
0x13bf   :  { %v2589_v43 = vpop.f32.mrf.mxu1 }
0x13c5   :  { %v1149_v47 = vpop.f32.mrf.mxu1 }
0x13c6   :  { %v1153_v48 = vadd.f32 %v1149_v47, %v1038_v46 }
0x13c7   :  { %v2620_v49 = vpop.f32.mrf.mxu1 }
0x13c8   :  { %2784 = vtanh.f32 %v1153_v48 }
0x13c9   :  { %2786 = vtanh.f32 %v932_v42 }
0x13d5   :  { %v2785_v50 = vpop.eup %2784 }
0x13d6   :  { %v1155_v51 = vmul.f32 %v2785_v50, %v2946_v19  ;;  %v2787_v57 = vpop.eup %2786 }
0x13d7   :  { %v934_v58 = vmul.f32 %v2787_v57, %v2946_v19 }
0x13d8   :  { %v1156_v10 = vadd.f32 %v1155_v51, %v2948_v21 }
0x13d9   :  { %v935_v63 = vadd.f32 %v934_v58, %v2948_v21 }
0x13da   :  { %1163 = vrot.lane.b32.xlu1 %v1156_v10, %s2843_s11  ;;  %v1161_v54 = vmul.f32 %v1159_v53, %v1156_v10 }
0x13db   :  { %v936_v4 = vmul.f32 %v935_v63, %v3127_v28 }
0x144c   :  { %v1164_v61 = vpop.permute.xlu1 %1163 }
0x144d   :  { %v1166_v52 = vmul.f32 %v1164_v61, %v1156_v10 }
0x144f   :  { %1168 = vrot.lane.b32.xlu1 %v1166_v52, %s2844_s14 }
0x14c1   :  { %v1169_v55 = vpop.permute.xlu1 %1168 }
0x14c2   :  { %v1171_v2 = vadd.f32 %v1169_v55, %v1161_v54  ;;  %v1053_v55 = vadd.f32 %v2603_v33, %v3195_v45 }
0x14c4   :  { %2788 = vtanh.f32 %v1171_v2 }
0x14d1   :  { %v2789_v60 = vpop.eup %2788 }
0x14d2   :  { %1174 = vrot.lane.b32.xlu0 %v2789_v60, %s2843_s11 }
0x14d6   :  { %938 = vrot.lane.b32.xlu0 %v935_v63, %s2843_s11 }
0x1544   :  { %v1175_v5 = vpop.permute.xlu0 %1174 }
0x1545   :  { %v3206_v1 = vmul.f32 %v1175_v5, %v1156_v10 }
0x1547   :  { %1179 = vrot.lane.b32.xlu1 %v3206_v1, %s2844_s14 }
0x1548   :  { %v939_v6 = vpop.permute.xlu0 %938 }
0x1549   :  { %v941_v3 = vmul.f32 %v939_v6, %v935_v63 }
0x154b   :  { %943 = vrot.lane.b32.xlu0 %v941_v3, %s2844_s14 }
0x15b9   :  { %v3211_v7 = vpop.permute.xlu1 %1179 }
0x15ba   :  { %2630 = vmatmul.mubr.msk.f32.vlgmr.msra.gmra.mxu1 %vm182_vm3, %v3211_v7 }
0x15bb   :  { %2644 = vmatpush3.msra.mxu1 %v3134_v29  ;;  %2651 = vmatprep.mubr.msk.f32.mxu1 %vm2841_vm2, %v2840_v0 }
0x15bc   :  { %2645 = vmatprep.subr.mxu1 %v2840_v0 }
0x15bd   :  { %v944_v8 = vpop.permute.xlu0 %943  ;;  %2646 = vmatpush3.msra.mxu1 %v3140_v30 }
0x15be   :  { %v946_v59 = vadd.f32 %v944_v8, %v936_v4  ;;  %2647 = vmatprep.subr.mxu1 %v2840_v0 }
0x15bf   :  { %2648 = vmatpush3.msra.mxu1 %v3147_v31 }
0x15c0   :  { %2790 = vtanh.f32 %v946_v59  ;;  %2649 = vmatprep.subr.mxu1 %v2840_v0 }
0x15c1   :  { %2650 = vmatpush3.msra.mxu1 %v3154_v32 }
0x15c2   :  { %2665 = vmatprep.subr.mxu1 %v2840_v0 }
0x15cd   :  { %v2791_v9 = vpop.eup %2790 }
0x15ce   :  { %949 = vrot.lane.b32.xlu0 %v2791_v9, %s2843_s11 }
0x1640   :  { %v950_v11 = vpop.permute.xlu0 %949 }
0x1641   :  { %v952_v12 = vmul.f32 %v950_v11, %v935_v63 }
0x1643   :  { %967 = vrot.lane.b32.xlu0 %v952_v12, %s2844_s14 }
0x167a   :  { %v1249_v14 = vpop.f32.mrf.mxu1 }
0x167b   :  { %v1253_v15 = vadd.f32 %v1249_v14, %v1043_v13  ;;  %v1058_v14 = vadd.f32 %v3195_v45, %v3257_v37 }
0x167c   :  { %v2631_v16 = vpop.f32.mrf.mxu1 }
0x167d   :  { %2792 = vtanh.f32 %v1253_v15 }
0x168a   :  { %v2793_v34 = vpop.eup %2792 }
0x168b   :  { %v1255_v17 = vmul.f32 %v2793_v34, %v2946_v19 }
0x168d   :  { %v1256_v18 = vadd.f32 %v1255_v17, %v2948_v21 }
0x168f   :  { %1259 = vrot.lane.b32.xlu1 %v1256_v18, %s2843_s11  ;;  %v1257_v24 = vmul.f32 %v1256_v18, %v1171_v2 }
0x16b5   :  { %v968_v20 = vpop.permute.xlu0 %967 }
0x16b6   :  { %2608 = vmatmul.mubr.msk.f32.gmra.mxu0 %vm182_vm3, %v968_v20 }
0x16b7   :  { %2640 = vmatprep.mubr.msk.f32.mxu0 %vm2841_vm2, %v2840_v0 }
0x1701   :  { %v1260_v56 = vpop.permute.xlu1 %1259 }
0x1702   :  { %v1262_v23 = vmul.f32 %v1260_v56, %v1256_v18 }
0x1704   :  { %1264 = vrot.lane.b32.xlu1 %v1262_v23, %s2844_s14 }
0x1776   :  { %v1265_v22 = vpop.permute.xlu1 %1264  ;;  %v3259_v38 = vpop.f32.mrf.mxu0 }
0x1777   :  { %v1267_v25 = vadd.f32 %v1265_v22, %v1257_v24 }
0x1778   :  { %v3261_v39 = vpop.f32.mrf.mxu0 }
0x1779   :  { %2794 = vtanh.f32 %v1267_v25 }
0x1786   :  { %v2795_v26 = vpop.eup %2794 }
0x1787   :  { %1270 = vrot.lane.b32.xlu1 %v2795_v26, %s2843_s11 }
0x17f9   :  { %v1271_v27 = vpop.permute.xlu1 %1270 }
0x17fa   :  { %v3237_v28 = vmul.f32 %v1271_v27, %v1256_v18 }
0x17fc   :  { %1275 = vrot.lane.b32.xlu1 %v3237_v28, %s2844_s14 }
0x186e   :  { %v3241_v62 = vpop.permute.xlu1 %1275 }
0x186f   :  { %2641 = vmatmul.mubr.msk.f32.vlgmr.msra.gmra.mxu0 %vm182_vm3, %v3241_v62 }
0x1870   :  { %2655 = vmatpush3.msra.mxu0 %v3134_v29  ;;  %2662 = vmatprep.mubr.msk.f32.mxu0 %vm2841_vm2, %v2840_v0 }
0x1871   :  { %2656 = vmatprep.subr.mxu0 %v2840_v0 }
0x1872   :  { %2657 = vmatpush3.msra.mxu0 %v3140_v30 }
0x1873   :  { %2658 = vmatprep.subr.mxu0 %v2840_v0 }
0x1874   :  { %2659 = vmatpush3.msra.mxu0 %v3147_v31 }
0x1875   :  { %2660 = vmatprep.subr.mxu0 %v2840_v0 }
0x1876   :  { %2661 = vmatpush3.msra.mxu0 %v3154_v32 }
0x1877   :  { %2676 = vmatprep.subr.mxu0 %v2840_v0 }
0x192f   :  { %v1345_v41 = vpop.f32.mrf.mxu0 }
0x1930   :  { %v1349_v42 = vadd.f32 %v1345_v41, %v1048_v40 }
0x1931   :  { %v2642_v43 = vpop.f32.mrf.mxu0 }
0x1932   :  { %2796 = vtanh.f32 %v1349_v42 }
0x193f   :  { %v2797_v44 = vpop.eup %2796 }
0x1940   :  { %v1351_v46 = vmul.f32 %v2797_v44, %v2946_v19 }
0x1942   :  { %v1352_v47 = vadd.f32 %v1351_v46, %v2948_v21 }
0x1944   :  { %1355 = vrot.lane.b32.xlu0 %v1352_v47, %s2843_s11  ;;  %v1353_v50 = vmul.f32 %v1352_v47, %v1267_v25 }
0x19b6   :  { %v1356_v48 = vpop.permute.xlu0 %1355 }
0x19b7   :  { %v1358_v49 = vmul.f32 %v1356_v48, %v1352_v47 }
0x19b9   :  { %1360 = vrot.lane.b32.xlu1 %v1358_v49, %s2844_s14 }
0x1a2b   :  { %v1361_v51 = vpop.permute.xlu1 %1360 }
0x1a2c   :  { %v1363_v10 = vadd.f32 %v1361_v51, %v1353_v50 }
0x1a2e   :  { %2798 = vtanh.f32 %v1363_v10 }
0x1a3b   :  { %v2799_v61 = vpop.eup %2798 }
0x1a3c   :  { %1366 = vrot.lane.b32.xlu0 %v2799_v61, %s2843_s11  ;;  %v1851_v61 = vld [vmem:[%s3484_s3 + $0x8] sm:$0xff] }
0x1aae   :  { %v1367_v52 = vpop.permute.xlu0 %1366 }
0x1aaf   :  { %v3269_v53 = vmul.f32 %v1367_v52, %v1352_v47  ;;  %v1850_v52 = vld [vmem:[%s3484_s3] sm:$0xff] }
0x1ab1   :  { %1371 = vrot.lane.b32.xlu1 %v3269_v53, %s2844_s14 }
0x1b23   :  { %v3273_v54 = vpop.permute.xlu1 %1371 }
0x1b24   :  { %2652 = vmatmul.mubr.msk.f32.vlgmr.msra.gmra.mxu1 %vm182_vm3, %v3273_v54 }
0x1b25   :  { %2666 = vmatpush3.msra.mxu1 %v3134_v29  ;;  %2673 = vmatprep.mubr.msk.f32.mxu1 %vm2841_vm2, %v2840_v0 }
0x1b26   :  { %2667 = vmatprep.subr.mxu1 %v2840_v0 }
0x1b27   :  { %2668 = vmatpush3.msra.mxu1 %v3140_v30 }
0x1b28   :  { %2669 = vmatprep.subr.mxu1 %v2840_v0 }
0x1b29   :  { %2670 = vmatpush3.msra.mxu1 %v3147_v31 }
0x1b2a   :  { %2671 = vmatprep.subr.mxu1 %v2840_v0 }
0x1b2b   :  { %2672 = vmatpush3.msra.mxu1 %v3154_v32 }
0x1b2c   :  { %2687 = vmatprep.subr.mxu1 %v2840_v0 }
0x1be4   :  { %v1441_v2 = vpop.f32.mrf.mxu1 }
0x1be5   :  { %v1445_v57 = vadd.f32 %v1441_v2, %v1053_v55 }
0x1be6   :  { %v2653_v58 = vpop.f32.mrf.mxu1 }
0x1be7   :  { %2800 = vtanh.f32 %v1445_v57 }
0x1bf4   :  { %v2801_v60 = vpop.eup %2800 }
0x1bf5   :  { %v1447_v63 = vmul.f32 %v2801_v60, %v2946_v19 }
0x1bf7   :  { %v1448_v5 = vadd.f32 %v1447_v63, %v2948_v21 }
0x1bf9   :  { %1451 = vrot.lane.b32.xlu0 %v1448_v5, %s2843_s11  ;;  %v1449_v4 = vmul.f32 %v1448_v5, %v1363_v10  ;;  %v1852_v10 = vld [vmem:[%s3484_s3 + $0x10] sm:$0xff] }
0x1c6b   :  { %v1452_v6 = vpop.permute.xlu0 %1451 }
0x1c6c   :  { %v1454_v3 = vmul.f32 %v1452_v6, %v1448_v5 }
0x1c6e   :  { %1456 = vrot.lane.b32.xlu1 %v1454_v3, %s2844_s14 }
0x1ce0   :  { %v1457_v8 = vpop.permute.xlu1 %1456 }
0x1ce1   :  { %v1459_v59 = vadd.f32 %v1457_v8, %v1449_v4 }
0x1ce3   :  { %2802 = vtanh.f32 %v1459_v59 }
0x1cf0   :  { %v2803_v9 = vpop.eup %2802 }
0x1cf1   :  { %1462 = vrot.lane.b32.xlu0 %v2803_v9, %s2843_s11  ;;  %v1073_v9 = vadd.f32 %v3259_v38, %v3195_v45  ;;  %v1858_v38 = vld [vmem:[%s3484_s3 + $0x40] sm:$0xff] }
0x1d63   :  { %v1463_v11 = vpop.permute.xlu0 %1462 }
0x1d64   :  { %v3293_v12 = vmul.f32 %v1463_v11, %v1448_v5 }
0x1d66   :  { %1467 = vrot.lane.b32.xlu1 %v3293_v12, %s2844_s14 }
0x1dd8   :  { %v3297_v13 = vpop.permute.xlu1 %1467 }
0x1dd9   :  { %2663 = vmatmul.mubr.msk.f32.vlgmr.msra.gmra.mxu0 %vm182_vm3, %v3297_v13 }
0x1dda   :  { %2677 = vmatpush3.msra.mxu0 %v3134_v29  ;;  %2684 = vmatprep.mubr.msk.f32.mxu0 %vm2841_vm2, %v2840_v0 }
0x1ddb   :  { %2678 = vmatprep.subr.mxu0 %v2840_v0 }
0x1ddc   :  { %2679 = vmatpush3.msra.mxu0 %v3140_v30 }
0x1ddd   :  { %2680 = vmatprep.subr.mxu0 %v2840_v0 }
0x1dde   :  { %2681 = vmatpush3.msra.mxu0 %v3147_v31 }
0x1ddf   :  { %2682 = vmatprep.subr.mxu0 %v2840_v0 }
0x1de0   :  { %2683 = vmatpush3.msra.mxu0 %v3154_v32 }
0x1e99   :  { %v1537_v15 = vpop.f32.mrf.mxu0 }
0x1e9a   :  { %v1541_v16 = vadd.f32 %v1537_v15, %v1058_v14 }
0x1e9b   :  { %v2664_v34 = vpop.f32.mrf.mxu0 }
0x1e9c   :  { %2804 = vtanh.f32 %v1541_v16 }
0x1ea9   :  { %v2805_v17 = vpop.eup %2804 }
0x1eaa   :  { %v1543_v18 = vmul.f32 %v2805_v17, %v2946_v19 }
0x1eac   :  { %v1544_v20 = vadd.f32 %v1543_v18, %v2948_v21 }
0x1eae   :  { %1547 = vrot.lane.b32.xlu0 %v1544_v20, %s2843_s11  ;;  %v1545_v24 = vmul.f32 %v1544_v20, %v1459_v59 }
0x1f20   :  { %v1548_v56 = vpop.permute.xlu0 %1547 }
0x1f21   :  { %v1550_v23 = vmul.f32 %v1548_v56, %v1544_v20 }
0x1f23   :  { %1552 = vrot.lane.b32.xlu1 %v1550_v23, %s2844_s14 }
0x1f95   :  { %v1553_v22 = vpop.permute.xlu1 %1552 }
0x1f96   :  { %v1555_v25 = vadd.f32 %v1553_v22, %v1545_v24 }
0x1f98   :  { %2806 = vtanh.f32 %v1555_v25 }
0x1fa5   :  { %v2807_v26 = vpop.eup %2806 }
0x1fa6   :  { %1558 = vrot.lane.b32.xlu0 %v2807_v26, %s2843_s11 }
0x2018   :  { %v1559_v27 = vpop.permute.xlu0 %1558 }
0x2019   :  { %v3317_v33 = vmul.f32 %v1559_v27, %v1544_v20 }
0x201b   :  { %1563 = vrot.lane.b32.xlu1 %v3317_v33, %s2844_s14 }
0x208d   :  { %v1564_v35 = vpop.permute.xlu1 %1563 }
0x208e   :  { %2674 = vmatmul.mubr.msk.f32.vlgmr.msra.gmra.mxu1 %vm182_vm3, %v1564_v35 }
0x208f   :  { %2688 = vmatpush3.msra.mxu1 %v3134_v29  ;;  %2695 = vmatprep.mubr.msk.f32.mxu1 %vm2841_vm2, %v2840_v0  ;;  %v1063_v29 = vadd.f32 %v3255_v36, %v3195_v45  ;;  %v1853_v36 = vld [vmem:[%s3484_s3 + $0x18] sm:$0xff] }
0x2090   :  { %2689 = vmatprep.subr.mxu1 %v2840_v0  ;;  %2698 = vmatprep.subr.mxu0 %v1853_v36 }
0x2091   :  { %2690 = vmatpush3.msra.mxu1 %v3140_v30 }
0x2092   :  { %2691 = vmatprep.subr.mxu1 %v2840_v0 }
0x2093   :  { %2692 = vmatpush3.msra.mxu1 %v3147_v31 }
0x2094   :  { %2693 = vmatprep.subr.mxu1 %v2840_v0 }
0x2095   :  { %2694 = vmatpush3.msra.mxu1 %v3154_v32 }
0x2096   :  { %2718 = vmatprep.subr.mxu1 %v2840_v0 }
0x214e   :  { %v1633_v37 = vpop.f32.mrf.mxu1 }
0x214f   :  { %v1637_v40 = vadd.f32 %v1633_v37, %v1063_v29 }
0x2150   :  { %v2675_v41 = vpop.f32.mrf.mxu1 }
0x2151   :  { %2808 = vtanh.f32 %v1637_v40 }
0x215e   :  { %v2809_v42 = vpop.eup %2808 }
0x215f   :  { %v1639_v30 = vmul.f32 %v2809_v42, %v2946_v19 }
0x2161   :  { %v1640_v43 = vadd.f32 %v1639_v30, %v2948_v21 }
0x2163   :  { %1643 = vrot.lane.b32.xlu0 %v1640_v43, %s2843_s11  ;;  %v1641_v32 = vmul.f32 %v1640_v43, %v1555_v25 }
0x21d5   :  { %v1644_v31 = vpop.permute.xlu0 %1643 }
0x21d6   :  { %v1646_v44 = vmul.f32 %v1644_v31, %v1640_v43 }
0x21d8   :  { %1648 = vrot.lane.b32.xlu1 %v1646_v44, %s2844_s14 }
0x224a   :  { %v1649_v46 = vpop.permute.xlu1 %1648 }
0x224b   :  { %v1651_v47 = vadd.f32 %v1649_v46, %v1641_v32 }
0x224d   :  { %2810 = vtanh.f32 %v1651_v47 }
0x225a   :  { %v2811_v48 = vpop.eup %2810 }
0x225b   :  { %1654 = vrot.lane.b32.xlu0 %v2811_v48, %s2843_s11 }
0x22cd   :  { %v1655_v49 = vpop.permute.xlu0 %1654 }
0x22ce   :  { %v3342_v50 = vmul.f32 %v1655_v49, %v1640_v43 }
0x22d0   :  { %1659 = vrot.lane.b32.xlu1 %v3342_v50, %s2844_s14 }
0x2342   :  { %v1660_v51 = vpop.permute.xlu1 %1659 }
0x2343   :  { %2685 = vmatmul.mubr.msk.f32.vlgmr.msra.gmra.mxu0 %vm182_vm3, %v1660_v51 }
0x2344   :  { %2699 = vmatpush3.msra.mxu0 %v1853_v36  ;;  %2706 = vmatprep.mubr.msk.f32.mxu0 %vm182_vm3, %v3211_v7  ;;  %v1068_v7 = vadd.f32 %v3195_v45, %v3261_v39  ;;  %v1861_v45 = vld [vmem:[%s3484_s3 + $0x58] sm:$0xff] }
0x2345   :  { %2700 = vmatprep.subr.mxu0 %v1852_v10 }
0x2346   :  { %2701 = vmatpush3.msra.mxu0 %v1852_v10 }
0x2347   :  { %2702 = vmatprep.subr.mxu0 %v1851_v61 }
0x2348   :  { %2703 = vmatpush3.msra.mxu0 %v1851_v61 }
0x2349   :  { %2704 = vmatprep.subr.mxu0 %v1850_v52 }
0x234a   :  { %2705 = vmatpush3.msra.mxu0 %v1850_v52 }
0x234b   :  { %2707 = vmatmul.mubr.msk.f32.vlgmr.msra.gmra.mxu0 %vm182_vm3, %v3241_v62  ;;  %2740 = vmatprep.subr.mxu0 %v2840_v0 }
0x234c   :  { %2709 = vmatprep.mubr.msk.f32.mxu0 %vm182_vm3, %v3273_v54 }
0x234f   :  { %2710 = vmatmul.mubr.msk.f32.gmra.mxu0 %vm182_vm3, %v3297_v13 }
0x2350   :  { %2712 = vmatprep.mubr.msk.f32.mxu0 %vm182_vm3, %v1564_v35 }
0x2353   :  { %2713 = vmatmul.mubr.msk.f32.gmra.mxu0 %vm182_vm3, %v1660_v51 }
0x2403   :  { %v1729_v55 = vpop.f32.mrf.mxu0 }
0x2404   :  { %v1733_v2 = vadd.f32 %v1729_v55, %v1068_v7 }
0x2405   :  { %v2686_v57 = vpop.f32.mrf.mxu0 }
0x2406   :  { %2812 = vtanh.f32 %v1733_v2 }
0x240b   :  { %v2708_v26 = vpop.f32.mrf.mxu0 }
0x240d   :  { %v1933_v27 = vpop.f32.mrf.mxu0 }
0x240f   :  { %v2711_v35 = vpop.f32.mrf.mxu0 }
0x2411   :  { %v1943_v29 = vpop.f32.mrf.mxu0 }
0x2413   :  { %v2813_v62 = vpop.eup %2812  ;;  %v2714_v37 = vpop.f32.mrf.mxu0 }
0x2414   :  { %v1735_v58 = vmul.f32 %v2813_v62, %v2946_v19 }
0x2415   :  { %v1953_v30 = vpop.f32.mrf.mxu0 }
0x2416   :  { %v1736_v60 = vadd.f32 %v1735_v58, %v2948_v21  ;;  %v1857_v58 = vld [vmem:[%s3484_s3 + $0x38] sm:$0xff] }
0x2418   :  { %1739 = vrot.lane.b32.xlu0 %v1736_v60, %s2843_s11  ;;  %v1737_v5 = vmul.f32 %v1736_v60, %v1651_v47 }
0x248a   :  { %v1740_v54 = vpop.permute.xlu0 %1739 }
0x248b   :  { %v1742_v63 = vmul.f32 %v1740_v54, %v1736_v60  ;;  %v1855_v54 = vld [vmem:[%s3484_s3 + $0x28] sm:$0xff] }
0x248d   :  { %1744 = vrot.lane.b32.xlu1 %v1742_v63, %s2844_s14  ;;  %v1854_v63 = vld [vmem:[%s3484_s3 + $0x20] sm:$0xff] }
0x24ff   :  { %v1745_v6 = vpop.permute.xlu1 %1744 }
0x2500   :  { %v1747_v3 = vadd.f32 %v1745_v6, %v1737_v5 }
0x2502   :  { %2814 = vtanh.f32 %v1747_v3 }
0x250f   :  { %v2815_v39 = vpop.eup %2814 }
0x2510   :  { %1750 = vrot.lane.b32.xlu0 %v2815_v39, %s2843_s11 }
0x2582   :  { %v1751_v4 = vpop.permute.xlu0 %1750 }
0x2583   :  { %v3374_v8 = vmul.f32 %v1751_v4, %v1736_v60  ;;  %v1856_v60 = vld [vmem:[%s3484_s3 + $0x30] sm:$0xff] }
0x2585   :  { %1755 = vrot.lane.b32.xlu1 %v3374_v8, %s2844_s14 }
0x25f7   :  { %v1756_v59 = vpop.permute.xlu1 %1755 }
0x25f8   :  { %2696 = vmatmul.mubr.msk.f32.vlgmr.msra.gmra.mxu1 %vm182_vm3, %v1756_v59  ;;  %2715 = vmatprep.mubr.msk.f32.mxu0 %vm182_vm3, %v1756_v59 }
0x25f9   :  { %2726 = vmatprep.mubr.msk.f32.mxu1 %vm2841_vm2, %v2840_v0  ;;  %2719 = vmatpush3.msra.mxu1 %v1861_v45 }
0x25fa   :  { %2720 = vmatprep.subr.mxu1 %v2840_v0 }
0x26b8   :  { %v1825_v11 = vpop.f32.mrf.mxu1 }
0x26b9   :  { %v1829_v13 = vadd.f32 %v1825_v11, %v1073_v9 }
0x26ba   :  { %v2697_v14 = vpop.f32.mrf.mxu1 }
0x26bb   :  { %2816 = vtanh.f32 %v1829_v13 }
0x26c8   :  { %v2817_v15 = vpop.eup %2816 }
0x26c9   :  { %v1831_v16 = vmul.f32 %v2817_v15, %v2946_v19  ;;  %v1860_v19 = vld [vmem:[%s3484_s3 + $0x50] sm:$0xff] }
0x26ca   :  { %2721 = vmatpush3.msra.mxu1 %v1860_v19 }
0x26cb   :  { %v1832_v34 = vadd.f32 %v1831_v16, %v2948_v21  ;;  %v1859_v21 = vld [vmem:[%s3484_s3 + $0x48] sm:$0xff]  ;;  %2722 = vmatprep.subr.mxu1 %v2840_v0 }
0x26cc   :  { %2723 = vmatpush3.msra.mxu1 %v1859_v21 }
0x26cd   :  { %1835 = vrot.lane.b32.xlu0 %v1832_v34, %s2843_s11  ;;  %v1833_v20 = vmul.f32 %v1832_v34, %v1747_v3  ;;  %2724 = vmatprep.subr.mxu1 %v2840_v0 }
0x26ce   :  { %2725 = vmatpush3.msra.mxu1 %v1858_v38 }
0x26cf   :  { %2729 = vmatprep.subr.mxu1 %v2840_v0 }
0x273f   :  { %v1836_v17 = vpop.permute.xlu0 %1835 }
0x2740   :  { %v1838_v18 = vmul.f32 %v1836_v17, %v1832_v34 }
0x2742   :  { %1840 = vrot.lane.b32.xlu1 %v1838_v18, %s2844_s14 }
0x27b4   :  { %v1841_v56 = vpop.permute.xlu1 %1840 }
0x27b5   :  { %v1843_v23 = vadd.f32 %v1841_v56, %v1833_v20 }
0x27b7   :  { %2818 = vtanh.f32 %v1843_v23 }
0x27c4   :  { %v2819_v24 = vpop.eup %2818 }
0x27c5   :  { %1846 = vrot.lane.b32.xlu0 %v2819_v24, %s2843_s11 }
0x2837   :  { %v1847_v22 = vpop.permute.xlu0 %1846 }
0x2838   :  { %v3405_v25 = vmul.f32 %v1847_v22, %v1832_v34 }
0x283a   :  { %1863 = vrot.lane.b32.xlu1 %v3405_v25, %s2844_s14 }
0x28ac   :  { %v1864_v40 = vpop.permute.xlu1 %1863 }
0x28ad   :  { %2716 = vmatmul.mubr.msk.f32.gmra.mxu0 %vm182_vm3, %v1864_v40  ;;  %2727 = vmatmul.mubr.msk.f32.vlgmr.msra.gmra.mxu1 %vm182_vm3, %v1864_v40  ;;  %v1974_v41 = vmul.f32 %v2708_v26, %v1864_v40  ;;  %v1973_v42 = vmul.f32 %v1933_v27, %v1864_v40  ;;  %v1977_v44 = vmul.f32 %v1953_v30, %v1864_v40 }
0x28ae   :  { %2737 = vmatprep.mubr.msk.f32.mxu1 %vm2841_vm2, %v2840_v0  ;;  %2748 = vmatprep.mubr.msk.f32.mxu0 %vm2841_vm2, %v2840_v0  ;;  %v1975_v32 = vmul.f32 %v1943_v29, %v1864_v40  ;;  %v1976_v36 = vmul.f32 %v2711_v35, %v1864_v40  ;;  %v1978_v49 = vmul.f32 %v2714_v37, %v1864_v40 }
0x28af   :  { %v1984_v43 = vsel %vm182_vm3, %v1974_v41, 0.0  ;;  %v1981_v31 = vsel %vm182_vm3, %v1973_v42, 0.0  ;;  %v1993_v46 = vsel %vm182_vm3, %v1977_v44, 0.0  ;;  %2730 = vmatpush3.msra.mxu1 %v1857_v58 }
0x28b0   :  { %1985 = vadd.xlane.f32.xlu1 %v1984_v43  ;;  %1982 = vadd.xlane.f32.xlu0 %v1981_v31  ;;  %v1987_v47 = vsel %vm182_vm3, %v1975_v32, 0.0  ;;  %v1990_v48 = vsel %vm182_vm3, %v1976_v36, 0.0  ;;  %v1996_v51 = vsel %vm182_vm3, %v1978_v49, 0.0 }
0x28b1   :  { %2731 = vmatprep.subr.mxu1 %v2840_v0 }
0x28b2   :  { %2732 = vmatpush3.msra.mxu1 %v1856_v60 }
0x28b3   :  { %2733 = vmatprep.subr.mxu1 %v2840_v0 }
0x28b4   :  { %1994 = vadd.xlane.f32.xlu1 %v1993_v46  ;;  %1988 = vadd.xlane.f32.xlu0 %v1987_v47 }
0x28b5   :  { %2734 = vmatpush3.msra.mxu1 %v1855_v54 }
0x28b6   :  { %2735 = vmatprep.subr.mxu1 %v2840_v0 }
0x28b7   :  { %2736 = vmatpush3.msra.mxu1 %v1854_v63 }
0x28b8   :  { %1991 = vadd.xlane.f32.xlu0 %v1990_v48 }
0x28bc   :  { %1997 = vadd.xlane.f32.xlu0 %v1996_v51 }
0x2939   :  { %v1983_v5 = vpop.xlane.xlu0 %1982  ;;  %v1986_v39 = vpop.xlane.xlu1 %1985 }
0x293d   :  { %v1989_v6 = vpop.xlane.xlu0 %1988  ;;  %v1995_v59 = vpop.xlane.xlu1 %1994 }
0x293e   :  { %v2005_v14 = vmax.f32 %v1983_v5, %v1995_v59 }
0x2941   :  { %v1992_v3 = vpop.xlane.xlu0 %1991 }
0x2945   :  { %v1998_v4 = vpop.xlane.xlu0 %1997 }
0x2946   :  { %v2006_v11 = vmax.f32 %v1986_v39, %v1998_v4 }
0x2948   :  { %v2009_v34 = vmax.f32 %v2005_v14, %v2006_v11 }
0x296d   :  { %v2717_v10 = vpop.f32.mrf.mxu0  ;;  %v3421_v61 = vpop.f32.mrf.mxu1 }
0x296e   :  { %v1980_v52 = vmul.f32 %v2717_v10, %v1864_v40 }
0x296f   :  { %v1963_v7 = vpop.f32.mrf.mxu0  ;;  %v2728_v55 = vpop.f32.mrf.mxu1 }
0x2970   :  { %v1979_v2 = vmul.f32 %v1963_v7, %v1864_v40  ;;  %v2002_v57 = vsel %vm182_vm3, %v1980_v52, 0.0 }
0x2971   :  { %2003 = vadd.xlane.f32.xlu0 %v2002_v57 }
0x2972   :  { %v1999_v62 = vsel %vm182_vm3, %v1979_v2, 0.0 }
0x2973   :  { %2000 = vadd.xlane.f32.xlu1 %v1999_v62 }
0x29fa   :  { %v2004_v9 = vpop.xlane.xlu0 %2003 }
0x29fb   :  { %v2008_v15 = vmax.f32 %v1992_v3, %v2004_v9 }
0x29fc   :  { %v2001_v13 = vpop.xlane.xlu1 %2000 }
0x29fd   :  { %v2007_v16 = vmax.f32 %v1989_v6, %v2001_v13 }
0x29ff   :  { %v2010_v17 = vmax.f32 %v2007_v16, %v2008_v15 }
0x2a01   :  { %v2011_v18 = vmax.f32 %v2009_v34, %v2010_v17 }
0x2a03   :  { %v2012_v20 = vsub.f32 %v1983_v5, %v2011_v18  ;;  %v2013_v56 = vsub.f32 %v1986_v39, %v2011_v18  ;;  %v2014_v23 = vsub.f32 %v1989_v6, %v2011_v18  ;;  %v2015_v45 = vsub.f32 %v1992_v3, %v2011_v18 }
0x2a04   :  { %v2016_v38 = vsub.f32 %v1995_v59, %v2011_v18  ;;  %v2017_v22 = vsub.f32 %v1998_v4, %v2011_v18  ;;  %v2018_v27 = vsub.f32 %v2001_v13, %v2011_v18  ;;  %v2019_v29 = vsub.f32 %v2004_v9, %v2011_v18 }
0x2a05   :  { %v2020_v19 = vmul.f32 1.442695, %v2012_v20  ;;  %v2022_v21 = vmul.f32 1.442695, %v2013_v56  ;;  %v2024_v24 = vmul.f32 1.442695, %v2014_v23 }
0x2a06   :  { %v2026_v26 = vmul.f32 1.442695, %v2015_v45  ;;  %v2028_v35 = vmul.f32 1.442695, %v2016_v38  ;;  %v2030_v37 = vmul.f32 1.442695, %v2017_v22 }
0x2a07   :  { %2820 = vpow2.f32 %v2020_v19  ;;  %v2032_v40 = vmul.f32 1.442695, %v2018_v27  ;;  %v2034_v41 = vmul.f32 1.442695, %v2019_v29  ;;  %v2223_v19 = vld [vmem:[%s3485_s4 + $0x8] sm:$0xff] }
0x2a08   :  { %2822 = vpow2.f32 %v2022_v21  ;;  %v2222_v21 = vld [vmem:[%s3485_s4] sm:$0xff] }
0x2a09   :  { %2824 = vpow2.f32 %v2024_v24  ;;  %v2358_v27 = vld [vmem:[%s3485_s4 + $0x20] ss:$0 sm:$0xff] }
0x2a0a   :  { %2826 = vpow2.f32 %v2026_v26 }
0x2a0b   :  { %2828 = vpow2.f32 %v2028_v35 }
0x2a0c   :  { %2830 = vpow2.f32 %v2030_v37 }
0x2a0d   :  { %2832 = vpow2.f32 %v2032_v40 }
0x2a0e   :  { %2834 = vpow2.f32 %v2034_v41 }
0x2a14   :  { %v2821_v42 = vpop.eup %2820 }
0x2a15   :  { %v2823_v30 = vpop.eup %2822 }
0x2a16   :  { %v2036_v43 = vadd.f32 %v2823_v30, %v2821_v42  ;;  %v2825_v31 = vpop.eup %2824 }
0x2a17   :  { %v2827_v32 = vpop.eup %2826 }
0x2a18   :  { %v2037_v44 = vadd.f32 %v2825_v31, %v2036_v43  ;;  %v2829_v47 = vpop.eup %2828 }
0x2a19   :  { %v2831_v48 = vpop.eup %2830 }
0x2a1a   :  { %v2038_v46 = vadd.f32 %v2827_v32, %v2037_v44  ;;  %v2833_v51 = vpop.eup %2832 }
0x2a1b   :  { %v2835_v52 = vpop.eup %2834 }
0x2a1c   :  { %v2039_v36 = vadd.f32 %v2829_v47, %v2038_v46 }
0x2a1e   :  { %v2040_v49 = vadd.f32 %v2831_v48, %v2039_v36 }
0x2a20   :  { %v2041_v10 = vadd.f32 %v2833_v51, %v2040_v49 }
0x2a22   :  { %v2042_v7 = vadd.f32 %v2835_v52, %v2041_v10 }
0x2a24   :  { %2836 = vrcp.f32 %v2042_v7 }
0x2a31   :  { %v2837_v55 = vpop.eup %2836 }
0x2a32   :  { %v2044_v2 = vmul.f32 %v2837_v55, %v2821_v42  ;;  %v2045_v57 = vmul.f32 %v2837_v55, %v2823_v30  ;;  %v2046_v62 = vmul.f32 %v2837_v55, %v2825_v31  ;;  %v2047_v58 = vmul.f32 %v2837_v55, %v2827_v32 }
0x2a33   :  { %v2048_v60 = vmul.f32 %v2837_v55, %v2829_v47  ;;  %v2049_v6 = vmul.f32 %v2837_v55, %v2831_v48  ;;  %v2050_v9 = vmul.f32 %v2837_v55, %v2833_v51  ;;  %v2051_v15 = vmul.f32 %v2837_v55, %v2835_v52 }
0x2a34   :  { %v2052_v54 = vmul.f32 %v2044_v2, %v3206_v1  ;;  %v2053_v63 = vmul.f32 %v2045_v57, %v3237_v28  ;;  %v2054_v5 = vmul.f32 %v2046_v62, %v3269_v53  ;;  %v2055_v3 = vmul.f32 %v2047_v58, %v3293_v12 }
0x2a35   :  { %v2056_v11 = vmul.f32 %v2048_v60, %v3317_v33  ;;  %v2057_v1 = vmul.f32 %v2049_v6, %v3342_v50  ;;  %v2058_v16 = vmul.f32 %v2050_v9, %v3374_v8  ;;  %v2059_v17 = vmul.f32 %v2051_v15, %v3405_v25  ;;  %v2225_v8 = vld [vmem:[%s3485_s4 + $0x18] sm:$0xff]  ;;  %v2224_v25 = vld [vmem:[%s3485_s4 + $0x10] sm:$0xff] }
0x2a36   :  { %v2061_v39 = vsel %vm2060_vm7, %v2052_v54, 0.0  ;;  %v2062_v4 = vsel %vm2060_vm7, %v2053_v63, 0.0  ;;  %v2064_v13 = vsel %vm2060_vm7, %v2054_v5, 0.0  ;;  %v2066_v28 = vsel %vm2060_vm7, %v2055_v3, 0.0  ;;  %2741 = vmatpush3.msra.mxu0 %v2225_v8 }
0x2a37   :  { %v2063_v59 = vadd.f32 %v2062_v4, %v2061_v39  ;;  %v2068_v12 = vsel %vm2060_vm7, %v2056_v11, 0.0  ;;  %v2070_v18 = vsel %vm2060_vm7, %v2057_v1, 0.0  ;;  %v2072_v33 = vsel %vm2060_vm7, %v2058_v16, 0.0  ;;  %2742 = vmatprep.subr.mxu0 %v2840_v0 }
0x2a38   :  { %v2074_v23 = vsel %vm2060_vm7, %v2059_v17, 0.0  ;;  %2743 = vmatpush3.msra.mxu0 %v2224_v25 }
0x2a39   :  { %v2065_v14 = vadd.f32 %v2064_v13, %v2063_v59  ;;  %2744 = vmatprep.subr.mxu0 %v2840_v0 }
0x2a3a   :  { %2745 = vmatpush3.msra.mxu0 %v2223_v19 }
0x2a3b   :  { %v2067_v53 = vadd.f32 %v2066_v28, %v2065_v14  ;;  %2746 = vmatprep.subr.mxu0 %v2840_v0 }
0x2a3c   :  { %2747 = vmatpush3.msra.mxu0 %v2222_v21 }
0x2a3d   :  { %v2069_v34 = vadd.f32 %v2068_v12, %v2067_v53 }
0x2a3f   :  { %v2071_v20 = vadd.f32 %v2070_v18, %v2069_v34 }
0x2a41   :  { %v2073_v56 = vadd.f32 %v2072_v33, %v2071_v20 }
0x2a43   :  { %v2075_v45 = vadd.f32 %v2074_v23, %v2073_v56 }
0x2a45   :  { %2147 = vrot.lane.b32.xlu1 %v2075_v45, %s2844_s14 }
0x2ab7   :  { %v2148_v50 = vpop.permute.xlu1 %2147 }
0x2ab8   :  { %2738 = vmatmul.mubr.msk.f32.vlgmr.msra.gmra.mxu1 %vm182_vm3, %v2148_v50 }
0x2b78   :  { %v2217_v38 = vpop.f32.mrf.mxu1 }
0x2b79   :  { %v2218_v24 = vadd.f32 %v2217_v38, %v3421_v61 }
0x2b7a   :  { %v2739_v22 = vpop.f32.mrf.mxu1 }
0x2b7b   :  { %2838 = vtanh.f32 %v2218_v24 }
0x2b88   :  { %v2839_v26 = vpop.eup %2838 }
0x2b89   :  { %2749 = vmatmul.mubr.msk.f32.vlgmr.msra.gmra.mxu0 %vm182_vm3, %v2839_v26 }
0x2c49   :  { %v2300_v35 = vpop.f32.mrf.mxu0 }
0x2c4a   :  { %v2301_v29 = vadd.f32 %v2358_v27, %v2300_v35 }
0x2c4b   :  { %v2750_v37 = vpop.f32.mrf.mxu0 }
0x2c4c   :  { %2305 = vst.msk [vmem:[%s3486_s5] sm:$0xff] %vm2304_vm8, %v2301_v29 }

</bundles_post_ra>
